<compile_context>
chip_gen: v7x
topology: tpu7x:2x2x1
jax: 0.10.0
libtpu: 0.0.40
codegen_flags: <defaults>
</compile_context>

<pallas_src>
import functools
import numpy as np

import jax
import jax.numpy as jnp
from jax.experimental import pallas as pl
from jax.experimental.pallas import tpu as pltpu


# ----------------------------------------------------------------------------
# Fused Pallas kernel: FC stack + per-SFC convT (dense matmul) stack
#                      + SFC-sum + final tanh
# ----------------------------------------------------------------------------
def _fused_decoder_kernel(*refs, n_fc, size_conv, sfc_nums, chunk_in):
    """refs = (x_tile, w0,b0, w1,b1, ..., out_tile).

    Weight refs are bf16, bias refs are f32 (1,N).  Every (w,b) pair is
    applied as  h = tanh(f32_acc(dot(bf16(h), w)) + b)  (MXU + VPU + EUP).
    FC layers come first; then, per conv layer, one (M,b) pair per SFC curve
    (the inverse-SFC permutation is pre-folded into the last layer's columns).
    """
    x_ref = refs[0]
    o_ref = refs[-1]
    p = refs[1:-1]

    def affine_tanh(h, w_ref, b_ref):
        acc = jnp.dot(h.astype(jnp.bfloat16), w_ref[...],
                      preferred_element_type=jnp.float32)   # MXU, f32 accumulate
        return jnp.tanh(acc + b_ref[...])                   # f32 bias add + tanh

    idx = 0
    h = x_ref[...].astype(jnp.float32)
    for _ in range(n_fc):
        h = affine_tanh(h, p[idx], p[idx + 1])
        idx += 2

    # split into per-SFC column chunks; run each SFC's convT stack separately
    # (avoids the half-zero block-diagonal matmul; exact same math)
    chunks = [h[:, s * chunk_in:(s + 1) * chunk_in] for s in range(sfc_nums)]
    for _ in range(size_conv):
        new_chunks = []
        for s in range(sfc_nums):
            new_chunks.append(affine_tanh(chunks[s], p[idx], p[idx + 1]))
            idx += 2
        chunks = new_chunks

    # sum over SFC curves (already in node order thanks to permutation folding)
    acc = chunks[0]
    for s in range(1, sfc_nums):
        acc = acc + chunks[s]
    o_ref[...] = jnp.tanh(acc).astype(o_ref.dtype)


def fused_decoder(x, fc_layers, conv_layers, cfg, batch_tile=128):
    """x:(B, dims_latent) f32.

    fc_layers   : [(w_bf16, b_f32), ...]                 applied in order
    conv_layers : [layer][sfc] -> (M_bf16, b_f32)        applied in order
    Returns (B, components*input_size) f32 in node order.
    """
    B, dl = x.shape
    sfc_nums = cfg["sfc_nums"]
    chunk_in = cfg["size_fc"][0] // sfc_nums
    out_width = cfg["components"] * cfg["input_size"]
    assert B % batch_tile == 0, "pad the batch to a multiple of batch_tile"

    operands = [x]
    for (w, b) in fc_layers:
        operands += [w, b.reshape(1, -1)]
    for layer in conv_layers:
        for (m, b) in layer:
            operands += [m, b.reshape(1, -1)]

    # x / out tiled over the batch grid; weights use a constant index_map so
    # they are DMA'd HBM->VMEM once and stay resident across all batch tiles.
    in_specs = [pl.BlockSpec((batch_tile, dl), lambda i: (i, 0))]
    for op in operands[1:]:
        in_specs.append(pl.BlockSpec(op.shape, lambda i: (0, 0)))

    kernel = functools.partial(
        _fused_decoder_kernel,
        n_fc=len(fc_layers),
        size_conv=len(conv_layers),
        sfc_nums=sfc_nums,
        chunk_in=chunk_in,
    )
    return pl.pallas_call(
        kernel,
        out_shape=jax.ShapeDtypeStruct((B, out_width), jnp.float32),
        grid=(B // batch_tile,),
        in_specs=in_specs,
        out_specs=pl.BlockSpec((batch_tile, out_width), lambda i: (i, 0)),
        compiler_params=pltpu.CompilerParams(
            dimension_semantics=("parallel",)),   # megacore shards batch on v7x
    )(*operands)


# ----------------------------------------------------------------------------
# Setup-time (numpy) transforms: ConvTranspose1d -> dense matmul,
# inverse-SFC permutation folding.  (One dense matrix PER SFC, no zero-padded
# block-diagonal stacking.)
# ----------------------------------------------------------------------------
def convT1d_dense(w, bias, Lin, stride, padding, output_padding):
    """w:(Cin, Cout, K) PyTorch ConvTranspose1d weight, bias:(Cout,).

    Returns (M, b_full, Lout) such that for x:(B, Cin, Lin):
        ConvTranspose1d(x) == (x.reshape(B, Cin*Lin) @ M + b_full)
                                  .reshape(B, Cout, Lout)
    (row index = ci*Lin + i, column index = co*Lout + o)
    """
    Cin, Cout, K = w.shape
    Lout = (Lin - 1) * stride - 2 * padding + K + output_padding
    M = np.zeros((Cin, Lin, Cout, Lout), dtype=np.float32)
    w_np = np.asarray(w, dtype=np.float32)
    for i in range(Lin):
        for j in range(K):
            o = i * stride - padding + j
            if 0 <= o < Lout:
                M[:, i, :, o] += w_np[:, :, j]
    b_full = np.repeat(np.asarray(bias, dtype=np.float32), Lout)
    return M.reshape(Cin * Lin, Cout * Lout), b_full, Lout


def build_fc_matmul_layers(fc_raw):
    """FC weights -> bf16 (MXU-native), biases stay f32."""
    return [(jnp.asarray(w, jnp.float32).astype(jnp.bfloat16),
             jnp.asarray(b, jnp.float32)) for (w, b) in fc_raw]


def build_conv_matmul_layers(convT_raw, orderings, sfc_indexes, cfg):
    """Per conv layer, per SFC: dense (Cin*Lin, Cout*Lout) matrix (bf16) + bias.

    For the last layer, the inverse space-filling reordering
    (b = b[..., ordering]) is folded into the columns (and bias entries).
    """
    sfc_nums = cfg["sfc_nums"]
    size_conv = cfg["size_conv"]
    layers = []
    for j in range(size_conv):
        per_sfc = []
        for i in range(sfc_nums):
            w, bias = convT_raw[i][j]
            Lin = cfg["conv_size"][-(j + 1)]
            M, b_full, Lout = convT1d_dense(
                np.asarray(w), np.asarray(bias), Lin,
                cfg["stride"], cfg["padding"], cfg["output_paddings"][j],
            )
            if j == size_conv - 1:
                ordering = np.asarray(orderings[sfc_indexes[i]], dtype=np.int64)
                Cout = cfg["channels"][-(j + 2)]
                col_perm = (np.arange(Cout)[:, None] * Lout
                            + ordering[None, :]).reshape(-1)
                M = M[:, col_perm]
                b_full = b_full[col_perm]
            per_sfc.append((jnp.asarray(M).astype(jnp.bfloat16),
                            jnp.asarray(b_full, jnp.float32)))
        layers.append(per_sfc)
    return layers
    # TODO(synk): at realistic node counts the dense M is O(nodes^2); switch to a
    # K/N-tiled grid with a VMEM accumulator that exploits M's banded structure
    # (each input column touches <= kernel_size*stride output columns), and size
    # tiles against v7x's 64 MiB VMEM (not v6e's 128 MiB) with an explicit
    # vmem_limit_bytes.


# ----------------------------------------------------------------------------
# Decoder forward (structure mirrors SFC_CAE_Decoder_md.forward, fully fused)
# ----------------------------------------------------------------------------
def decoder_forward(x, fc_layers, conv_layers, cfg, batch_tile=128):
    out_flat = fused_decoder(x, fc_layers, conv_layers, cfg, batch_tile)
    B = x.shape[0]
    return out_flat.reshape(B, cfg["components"], cfg["input_size"])


# ----------------------------------------------------------------------------
# Pure-JAX (unfused) reference for correctness checking.  It mirrors the
# kernel's arithmetic (bf16 matmul operands, f32 accumulate / bias / tanh) but
# keeps the layers, gather and SFC-sum unfused, so the allclose check verifies
# the dense-matrix conversion, permutation folding and fusion structure.
# ----------------------------------------------------------------------------
def reference_forward(x, fc_raw, convT_raw, orderings, cfg):
    def mm(h, w, b):
        return jnp.tanh(
            jnp.dot(h.astype(jnp.bfloat16),
                    jnp.asarray(w, jnp.float32).astype(jnp.bfloat16),
                    preferred_element_type=jnp.float32)
            + jnp.asarray(b, jnp.float32))

    h = x
    for (w, b) in fc_raw:
        h = mm(h, w, b)
    chunks = jnp.split(h, cfg["sfc_nums"], axis=1)
    zs = []
    for i in range(cfg["sfc_nums"]):
        B = chunks[i].shape[0]
        b_act = chunks[i]                                       # (B, Cin*Lin)
        for j in range(cfg["size_conv"]):
            w, bias = convT_raw[i][j]
            Lin = cfg["conv_size"][-(j + 1)]
            M, b_full, _ = convT1d_dense(
                np.asarray(w), np.asarray(bias), Lin,
                cfg["stride"], cfg["padding"], cfg["output_paddings"][j],
            )
            b_act = mm(b_act, M, b_full)
        Cout = cfg["channels"][0]
        b3 = b_act.reshape(B, Cout, cfg["input_size"])
        ordering = jnp.asarray(orderings[cfg["sfc_indexes"][i]])
        zs.append(jnp.take(b3, ordering, axis=-1))
    return jnp.tanh(sum(zs))


# ----------------------------------------------------------------------------
# Deterministic parameter construction (f32 "PyTorch" params)
# ----------------------------------------------------------------------------
def build_params(cfg, key):
    keys = iter(jax.random.split(key, 64))

    def unif(shape, lo=-0.1, hi=0.1):
        return jax.random.uniform(next(keys), shape, jnp.float32, lo, hi)

    # FC layers: Linear(size_fc[-k], size_fc[-k-1]) for k = 1 .. len(size_fc)-1
    size_fc = cfg["size_fc"]
    fcs = []
    for k in range(1, len(size_fc)):
        in_f, out_f = size_fc[-k], size_fc[-k - 1]
        w = unif((in_f, out_f))                 # stored as (in, out) for x @ W
        b = jnp.full((out_f,), 0.001, jnp.float32)
        fcs.append((w, b))

    # ConvTranspose1d layers (separate weights per SFC: share_conv_weights=False)
    channels = cfg["channels"]
    convT_raw = []
    for i in range(cfg["sfc_nums"]):
        layers = []
        for j in range(1, cfg["size_conv"] + 1):
            in_ch = channels[-j]
            out_ch = channels[-j - 1]
            w = unif((in_ch, out_ch, cfg["kernel_size"]))
            bias = jnp.full((out_ch,), 0.001, jnp.float32)
            layers.append((w, bias))
        convT_raw.append(layers)

    # inverse space-filling orderings: one permutation of node ids per curve
    orderings = np.stack(
        [np.asarray(jax.random.permutation(next(keys), cfg["input_size"]))
         for _ in range(cfg["sfc_nums"])],
        axis=0,
    ).astype(np.int64)

    return fcs, convT_raw, orderings


# ----------------------------------------------------------------------------
if __name__ == "__main__":
    cfg = dict(
        batch=256,                     # batched so the MXU / pipeline is fed
        dims_latent=16,
        components=2,
        sfc_nums=2,
        input_size=64,                 # number of mesh nodes
        num_final_channels=8,
        size_conv=2,
        channels=[2, 4, 8],            # encoder.channels (input_channel ... final)
        conv_size=[64, 32, 16],        # encoder.conv_size
        conv_size_last=16,
        kernel_size=4,
        stride=2,
        padding=1,
        output_paddings=[0, 0],
        size_fc=[256, 64, 16],         # encoder.size_fc; 256 = 2 * 8 * 16
        sfc_indexes=[0, 1],
    )
    BATCH_TILE = 128                   # 128 rows/tile: fine on v5e/v6e/v7x
    # TODO(synk): NN / NearestNeighbouring_md, variational (KL), coords,
    # second_sfc / interpolation and output_linear branches of the reference
    # module are not exercised by this configuration and are not implemented.

    key = jax.random.PRNGKey(0)
    k_params, k_x = jax.random.split(key)
    fc_raw, convT_raw, orderings = build_params(cfg, k_params)

    fc_layers = build_fc_matmul_layers(fc_raw)
    conv_layers = build_conv_matmul_layers(
        convT_raw, orderings, cfg["sfc_indexes"], cfg)

    x = jax.random.normal(k_x, (cfg["batch"], cfg["dims_latent"]), jnp.float32)

    out = decoder_forward(x, fc_layers, conv_layers, cfg, batch_tile=BATCH_TILE)
    out = jax.block_until_ready(out)

    assert out.shape == (cfg["batch"], cfg["components"], cfg["input_size"]), out.shape
    assert bool(jnp.all(jnp.isfinite(out)))

    # correctness check vs unfused pure-JAX reference (verifies the dense-matrix
    # conversion, permutation folding, per-SFC split and fusion)
    ref = jax.block_until_ready(
        reference_forward(x, fc_raw, convT_raw, orderings, cfg))
    assert bool(jnp.allclose(out, ref, rtol=1e-2, atol=1e-3)), (
        float(jnp.max(jnp.abs(out - ref))))

    print("KERNEL_OK")
</pallas_src>

<mosaic_0001>
module attributes {stable_mosaic.version = 11 : i64} {
  func.func @_fused_decoder_kernel(%arg0: i32, %arg1: memref<128x16xf32, #tpu.memory_space<vmem>>, %arg2: memref<16x64xbf16, #tpu.memory_space<vmem>>, %arg3: memref<1x64xf32, #tpu.memory_space<vmem>>, %arg4: memref<64x256xbf16, #tpu.memory_space<vmem>>, %arg5: memref<1x256xf32, #tpu.memory_space<vmem>>, %arg6: memref<128x128xbf16, #tpu.memory_space<vmem>>, %arg7: memref<1x128xf32, #tpu.memory_space<vmem>>, %arg8: memref<128x128xbf16, #tpu.memory_space<vmem>>, %arg9: memref<1x128xf32, #tpu.memory_space<vmem>>, %arg10: memref<128x128xbf16, #tpu.memory_space<vmem>>, %arg11: memref<1x128xf32, #tpu.memory_space<vmem>>, %arg12: memref<128x128xbf16, #tpu.memory_space<vmem>>, %arg13: memref<1x128xf32, #tpu.memory_space<vmem>>, %arg14: memref<128x128xf32, #tpu.memory_space<vmem>>) attributes {dimension_semantics = [#tpu.dimension_semantics<parallel>], iteration_bounds = array<i64: 2>, scalar_prefetch = 0 : i64, scratch_operands = 0 : i64, tpu.core_type = #tpu.core_type<tc>, window_params = [{transform_indices = @transform_0, window_bounds = array<i64: 128, 16>}, {pipeline_mode = #tpu.pipeline_mode<synchronous>, transform_indices = @transform_1, window_bounds = array<i64: 16, 64>}, {pipeline_mode = #tpu.pipeline_mode<synchronous>, transform_indices = @transform_2, window_bounds = array<i64: 1, 64>}, {pipeline_mode = #tpu.pipeline_mode<synchronous>, transform_indices = @transform_3, window_bounds = array<i64: 64, 256>}, {pipeline_mode = #tpu.pipeline_mode<synchronous>, transform_indices = @transform_4, window_bounds = array<i64: 1, 256>}, {pipeline_mode = #tpu.pipeline_mode<synchronous>, transform_indices = @transform_5, window_bounds = array<i64: 128, 128>}, {pipeline_mode = #tpu.pipeline_mode<synchronous>, transform_indices = @transform_6, window_bounds = array<i64: 1, 128>}, {pipeline_mode = #tpu.pipeline_mode<synchronous>, transform_indices = @transform_7, window_bounds = array<i64: 128, 128>}, {pipeline_mode = #tpu.pipeline_mode<synchronous>, transform_indices = @transform_8, window_bounds = array<i64: 1, 128>}, {pipeline_mode = #tpu.pipeline_mode<synchronous>, transform_indices = @transform_9, window_bounds = array<i64: 128, 128>}, {pipeline_mode = #tpu.pipeline_mode<synchronous>, transform_indices = @transform_10, window_bounds = array<i64: 1, 128>}, {pipeline_mode = #tpu.pipeline_mode<synchronous>, transform_indices = @transform_11, window_bounds = array<i64: 128, 128>}, {pipeline_mode = #tpu.pipeline_mode<synchronous>, transform_indices = @transform_12, window_bounds = array<i64: 1, 128>}, {transform_indices = @transform_13, window_bounds = array<i64: 128, 128>}]} {
    %c0 = arith.constant 0 : index
    %c0_0 = arith.constant 0 : index
    %0 = vector.load %arg1[%c0, %c0_0] : memref<128x16xf32, #tpu.memory_space<vmem>>, vector<128x16xf32>
    %1 = arith.truncf %0 : vector<128x16xf32> to vector<128x16xbf16>
    %c0_1 = arith.constant 0 : index
    %c0_2 = arith.constant 0 : index
    %2 = vector.load %arg2[%c0_1, %c0_2] : memref<16x64xbf16, #tpu.memory_space<vmem>>, vector<16x64xbf16>
    %cst = arith.constant dense<0.000000e+00> : vector<128x64xf32>
    %3 = tpu.matmul %1, %2, %cst {dimension_numbers = #tpu.dot_dimension_numbers<[1], [0], [0], [1], [0, 0, 1, 1], [], []>} : vector<128x16xbf16>, vector<16x64xbf16>, vector<128x64xf32> -> vector<128x64xf32>
    %c0_3 = arith.constant 0 : index
    %c0_4 = arith.constant 0 : index
    %4 = vector.load %arg3[%c0_3, %c0_4] : memref<1x64xf32, #tpu.memory_space<vmem>>, vector<1x64xf32>
    %5 = vector.broadcast %4 : vector<1x64xf32> to vector<128x64xf32>
    %6 = arith.addf %3, %5 : vector<128x64xf32>
    %7 = math.tanh %6 : vector<128x64xf32>
    %8 = arith.truncf %7 : vector<128x64xf32> to vector<128x64xbf16>
    %c0_5 = arith.constant 0 : index
    %c0_6 = arith.constant 0 : index
    %9 = vector.load %arg4[%c0_5, %c0_6] : memref<64x256xbf16, #tpu.memory_space<vmem>>, vector<64x256xbf16>
    %cst_7 = arith.constant dense<0.000000e+00> : vector<128x256xf32>
    %10 = tpu.matmul %8, %9, %cst_7 {dimension_numbers = #tpu.dot_dimension_numbers<[1], [0], [0], [1], [0, 0, 1, 1], [], []>} : vector<128x64xbf16>, vector<64x256xbf16>, vector<128x256xf32> -> vector<128x256xf32>
    %c0_8 = arith.constant 0 : index
    %c0_9 = arith.constant 0 : index
    %11 = vector.load %arg5[%c0_8, %c0_9] : memref<1x256xf32, #tpu.memory_space<vmem>>, vector<1x256xf32>
    %12 = vector.broadcast %11 : vector<1x256xf32> to vector<128x256xf32>
    %13 = arith.addf %10, %12 : vector<128x256xf32>
    %14 = math.tanh %13 : vector<128x256xf32>
    %15 = vector.extract_strided_slice %14 {offsets = [0, 0], sizes = [128, 128], strides = [1, 1]} : vector<128x256xf32> to vector<128x128xf32>
    %16 = vector.extract_strided_slice %14 {offsets = [0, 128], sizes = [128, 128], strides = [1, 1]} : vector<128x256xf32> to vector<128x128xf32>
    %17 = arith.truncf %15 : vector<128x128xf32> to vector<128x128xbf16>
    %c0_10 = arith.constant 0 : index
    %c0_11 = arith.constant 0 : index
    %18 = vector.load %arg6[%c0_10, %c0_11] : memref<128x128xbf16, #tpu.memory_space<vmem>>, vector<128x128xbf16>
    %cst_12 = arith.constant dense<0.000000e+00> : vector<128x128xf32>
    %19 = tpu.matmul %17, %18, %cst_12 {dimension_numbers = #tpu.dot_dimension_numbers<[1], [0], [0], [1], [0, 0, 1, 1], [], []>} : vector<128x128xbf16>, vector<128x128xbf16>, vector<128x128xf32> -> vector<128x128xf32>
    %c0_13 = arith.constant 0 : index
    %c0_14 = arith.constant 0 : index
    %20 = vector.load %arg7[%c0_13, %c0_14] : memref<1x128xf32, #tpu.memory_space<vmem>>, vector<1x128xf32>
    %21 = vector.broadcast %20 : vector<1x128xf32> to vector<128x128xf32>
    %22 = arith.addf %19, %21 : vector<128x128xf32>
    %23 = math.tanh %22 : vector<128x128xf32>
    %24 = arith.truncf %16 : vector<128x128xf32> to vector<128x128xbf16>
    %c0_15 = arith.constant 0 : index
    %c0_16 = arith.constant 0 : index
    %25 = vector.load %arg8[%c0_15, %c0_16] : memref<128x128xbf16, #tpu.memory_space<vmem>>, vector<128x128xbf16>
    %cst_17 = arith.constant dense<0.000000e+00> : vector<128x128xf32>
    %26 = tpu.matmul %24, %25, %cst_17 {dimension_numbers = #tpu.dot_dimension_numbers<[1], [0], [0], [1], [0, 0, 1, 1], [], []>} : vector<128x128xbf16>, vector<128x128xbf16>, vector<128x128xf32> -> vector<128x128xf32>
    %c0_18 = arith.constant 0 : index
    %c0_19 = arith.constant 0 : index
    %27 = vector.load %arg9[%c0_18, %c0_19] : memref<1x128xf32, #tpu.memory_space<vmem>>, vector<1x128xf32>
    %28 = vector.broadcast %27 : vector<1x128xf32> to vector<128x128xf32>
    %29 = arith.addf %26, %28 : vector<128x128xf32>
    %30 = math.tanh %29 : vector<128x128xf32>
    %31 = arith.truncf %23 : vector<128x128xf32> to vector<128x128xbf16>
    %c0_20 = arith.constant 0 : index
    %c0_21 = arith.constant 0 : index
    %32 = vector.load %arg10[%c0_20, %c0_21] : memref<128x128xbf16, #tpu.memory_space<vmem>>, vector<128x128xbf16>
    %cst_22 = arith.constant dense<0.000000e+00> : vector<128x128xf32>
    %33 = tpu.matmul %31, %32, %cst_22 {dimension_numbers = #tpu.dot_dimension_numbers<[1], [0], [0], [1], [0, 0, 1, 1], [], []>} : vector<128x128xbf16>, vector<128x128xbf16>, vector<128x128xf32> -> vector<128x128xf32>
    %c0_23 = arith.constant 0 : index
    %c0_24 = arith.constant 0 : index
    %34 = vector.load %arg11[%c0_23, %c0_24] : memref<1x128xf32, #tpu.memory_space<vmem>>, vector<1x128xf32>
    %35 = vector.broadcast %34 : vector<1x128xf32> to vector<128x128xf32>
    %36 = arith.addf %33, %35 : vector<128x128xf32>
    %37 = math.tanh %36 : vector<128x128xf32>
    %38 = arith.truncf %30 : vector<128x128xf32> to vector<128x128xbf16>
    %c0_25 = arith.constant 0 : index
    %c0_26 = arith.constant 0 : index
    %39 = vector.load %arg12[%c0_25, %c0_26] : memref<128x128xbf16, #tpu.memory_space<vmem>>, vector<128x128xbf16>
    %cst_27 = arith.constant dense<0.000000e+00> : vector<128x128xf32>
    %40 = tpu.matmul %38, %39, %cst_27 {dimension_numbers = #tpu.dot_dimension_numbers<[1], [0], [0], [1], [0, 0, 1, 1], [], []>} : vector<128x128xbf16>, vector<128x128xbf16>, vector<128x128xf32> -> vector<128x128xf32>
    %c0_28 = arith.constant 0 : index
    %c0_29 = arith.constant 0 : index
    %41 = vector.load %arg13[%c0_28, %c0_29] : memref<1x128xf32, #tpu.memory_space<vmem>>, vector<1x128xf32>
    %42 = vector.broadcast %41 : vector<1x128xf32> to vector<128x128xf32>
    %43 = arith.addf %40, %42 : vector<128x128xf32>
    %44 = math.tanh %43 : vector<128x128xf32>
    %45 = arith.addf %37, %44 : vector<128x128xf32>
    %46 = math.tanh %45 : vector<128x128xf32>
    %c0_30 = arith.constant 0 : index
    %c0_31 = arith.constant 0 : index
    %47 = vector.load %arg14[%c0_30, %c0_31] : memref<128x128xf32, #tpu.memory_space<vmem>>, vector<128x128xf32>
    tpu.vector_store %arg14[%c0_30, %c0_31], %46 {strides = array<i32>} : memref<128x128xf32, #tpu.memory_space<vmem>>, vector<128x128xf32>,
    return
  }
  func.func @transform_0(%arg0: i32) -> (i32, i32) {
    %c0_i32 = arith.constant 0 : i32
    %c0_i32_0 = arith.constant 0 : i32
    return %arg0, %c0_i32 : i32, i32
  }
  func.func @transform_1(%arg0: i32) -> (i32, i32) {
    %c0_i32 = arith.constant 0 : i32
    %c0_i32_0 = arith.constant 0 : i32
    %c0_i32_1 = arith.constant 0 : i32
    return %c0_i32, %c0_i32_0 : i32, i32
  }
  func.func @transform_2(%arg0: i32) -> (i32, i32) {
    %c0_i32 = arith.constant 0 : i32
    %c0_i32_0 = arith.constant 0 : i32
    %c0_i32_1 = arith.constant 0 : i32
    return %c0_i32, %c0_i32_0 : i32, i32
  }
  func.func @transform_3(%arg0: i32) -> (i32, i32) {
    %c0_i32 = arith.constant 0 : i32
    %c0_i32_0 = arith.constant 0 : i32
    %c0_i32_1 = arith.constant 0 : i32
    return %c0_i32, %c0_i32_0 : i32, i32
  }
  func.func @transform_4(%arg0: i32) -> (i32, i32) {
    %c0_i32 = arith.constant 0 : i32
    %c0_i32_0 = arith.constant 0 : i32
    %c0_i32_1 = arith.constant 0 : i32
    return %c0_i32, %c0_i32_0 : i32, i32
  }
  func.func @transform_5(%arg0: i32) -> (i32, i32) {
    %c0_i32 = arith.constant 0 : i32
    %c0_i32_0 = arith.constant 0 : i32
    %c0_i32_1 = arith.constant 0 : i32
    return %c0_i32, %c0_i32_0 : i32, i32
  }
  func.func @transform_6(%arg0: i32) -> (i32, i32) {
    %c0_i32 = arith.constant 0 : i32
    %c0_i32_0 = arith.constant 0 : i32
    %c0_i32_1 = arith.constant 0 : i32
    return %c0_i32, %c0_i32_0 : i32, i32
  }
  func.func @transform_7(%arg0: i32) -> (i32, i32) {
    %c0_i32 = arith.constant 0 : i32
    %c0_i32_0 = arith.constant 0 : i32
    %c0_i32_1 = arith.constant 0 : i32
    return %c0_i32, %c0_i32_0 : i32, i32
  }
  func.func @transform_8(%arg0: i32) -> (i32, i32) {
    %c0_i32 = arith.constant 0 : i32
    %c0_i32_0 = arith.constant 0 : i32
    %c0_i32_1 = arith.constant 0 : i32
    return %c0_i32, %c0_i32_0 : i32, i32
  }
  func.func @transform_9(%arg0: i32) -> (i32, i32) {
    %c0_i32 = arith.constant 0 : i32
    %c0_i32_0 = arith.constant 0 : i32
    %c0_i32_1 = arith.constant 0 : i32
    return %c0_i32, %c0_i32_0 : i32, i32
  }
  func.func @transform_10(%arg0: i32) -> (i32, i32) {
    %c0_i32 = arith.constant 0 : i32
    %c0_i32_0 = arith.constant 0 : i32
    %c0_i32_1 = arith.constant 0 : i32
    return %c0_i32, %c0_i32_0 : i32, i32
  }
  func.func @transform_11(%arg0: i32) -> (i32, i32) {
    %c0_i32 = arith.constant 0 : i32
    %c0_i32_0 = arith.constant 0 : i32
    %c0_i32_1 = arith.constant 0 : i32
    return %c0_i32, %c0_i32_0 : i32, i32
  }
  func.func @transform_12(%arg0: i32) -> (i32, i32) {
    %c0_i32 = arith.constant 0 : i32
    %c0_i32_0 = arith.constant 0 : i32
    %c0_i32_1 = arith.constant 0 : i32
    return %c0_i32, %c0_i32_0 : i32, i32
  }
  func.func @transform_13(%arg0: i32) -> (i32, i32) {
    %c0_i32 = arith.constant 0 : i32
    %c0_i32_0 = arith.constant 0 : i32
    return %arg0, %c0_i32 : i32, i32
  }
}

</mosaic_0001>

<bundles_post_ra>
// kernel: tpu_custom_call.1
= control target key start
LH: loop header
LB: loop body
LE: loop exit
PB: predicated region body
PF: predicated region fallthrough
CT: control target
= control target key end

     0   :  { %s3444_s0 = inlined_call_operand.vmem [shape: f32[256,16], index: 0, kind: input, shape index: {}]   ;;  %s3445_s1 = inlined_call_operand.hbm [shape: bf16[16,64], index: 1, kind: input, shape index: {}]   ;;  %s3446_s2 = inlined_call_operand.hbm [shape: f32[1,64], index: 2, kind: input, shape index: {}]   ;;  %s3447_s3 = inlined_call_operand.vmem [shape: bf16[64,256], index: 3, kind: input, shape index: {}]   ;;  %s3448_s4 = inlined_call_operand.vmem [shape: f32[1,256], index: 4, kind: input, shape index: {}]   ;;  %s3449_s5 = inlined_call_operand.vmem [shape: bf16[128,128], index: 5, kind: input, shape index: {}]   ;;  %s3450_s6 = inlined_call_operand.hbm [shape: f32[1,128], index: 6, kind: input, shape index: {}]   ;;  %s3451_s7 = inlined_call_operand.vmem [shape: bf16[128,128], index: 7, kind: input, shape index: {}]   ;;  %s3452_s8 = inlined_call_operand.hbm [shape: f32[1,128], index: 8, kind: input, shape index: {}]   ;;  %s3453_s9 = inlined_call_operand.vmem [shape: bf16[128,128], index: 9, kind: input, shape index: {}]   ;;  %s3454_s10 = inlined_call_operand.vmem [shape: f32[1,128], index: 10, kind: input, shape index: {}]   ;;  %s3455_s11 = inlined_call_operand.vmem [shape: bf16[128,128], index: 11, kind: input, shape index: {}]   ;;  %s3456_s12 = inlined_call_operand.vmem [shape: f32[1,128], index: 12, kind: input, shape index: {}]   ;;  %s3457_s13 = inlined_call_operand.hbm [shape: f32[256,128], index: 13, kind: output, shape index: {}]  }
   0x1   :  { %3468 = sst [smem:[#allocation21_spill]] %s3446_s2 }
   0x2   :  { %3469 = sst [smem:[#allocation22_spill]] %s3457_s13 }
   0x3   :  { %18 = vsyncpa [#allocation3], 0 }
   0x4   :  { %19 = vsyncpa [#allocation6], 0 }
   0x5   :  { %20 = vsyncpa [#allocation9], 0 }
   0x6   :  { %21 = vsyncpa [#allocation4], 0 }
   0x7   :  { %23 = vsyncpa [#allocation4 + $0x1], 0  ;;  %s2816_s25 = smov 0   ;;  %s2818_s26 = smov 0  }
   0x8   :  { %s2820_s27 = smov 0   ;;  %s2822_s28 = smov 0  }
   0x9 LB: > { %3470 = sst [smem:[#allocation15_spill]] %s2722_s25  ;;  %s2837_s29 = sadd.s32 4294967295, %s2734_s28   ;;  %s2734_s28 = sphi %s2822_s28, %s3495_s28   ;;  %s2730_s27 = sphi %s2820_s27, %s3500_s27   ;;  %s2726_s26 = sphi %s2818_s26, %s3499_s26   ;;  %s2722_s25 = sphi %s2816_s25, %s3498_s25  }
   0xa   : > { %3471 = sst [smem:[#allocation16_spill]] %s2730_s27  ;;  %s1844_s30 = sadd.s32 4294967294, %s2734_s28  }
   0xb   : > { %3472 = sst [smem:[#allocation17_spill]] %s2734_s28  ;;  %s2841_s14 = sadd.s32 1, %s2734_s28  }
   0xc   : > { %3473 = sst [smem:[#allocation18_spill]] %s2841_s14  ;;  %s314_s15 = sadd.s32 1, %s2730_s27 }
   0xd   : > { %s311_s16 = ssub.s32 %s2734_s28, %s2841_s14  ;;  %p324_p0 = scmp.ne.s32.totalorder %s2730_s27, %s2726_s26 }
   0xe   : > { %p312_p1 = scmp.eq.s32.totalorder %s311_s16, 0  ;;  %p325_p2 = scmp.eq.s32.totalorder %s2837_s29, 1 }
   0xf   : > { %p330_p3 = scmp.ne.s32.totalorder %s2726_s26, %s2722_s25  ;;  %p331_p4 = scmp.eq.s32.totalorder %s1844_s30, 1 }
  0x10   : > { %s2852_s17 = scalar_select %p312_p1, %s2730_s27, %s314_s15  }
  0x11   : > { %p2854_p5 = por %p325_p2, %p324_p0  ;;  %p2858_p6 = por %p331_p4, %p330_p3 }
  0x12   : > { %3474 = sst [smem:[#allocation19_spill]] %s2852_s17  ;;  %p1845_p7 = scmp.ge.s32.totalorder %s2734_s28, 1 }
  0x13   : > { %s3475_s18 = scalar_select %p2854_p5, 1, 0 }
  0x14   : > { %s3476_s19 = scalar_select %p2858_p6, 1, 0 }
  0x15   : > { %p338_p8 = scmp.lt.s32.totalorder %s2734_s28, 3  ;;  %p3463_p9 = scmp.eq.s32.totalorder %s2837_s29, 0 }
  0x16   : > { %3477 = sst [smem:[#allocation20_spill]] %s3476_s19  ;;  %s2736_s21 = smov [#allocation5]  }
  0x17   : > { %p2865_p10 = pnand %p1845_p7, %p338_p8  ;;  %s364_s22 = sshll.u32 %s2736_s21, 4  ;;  %s365_s22 = int_to_ptr.vmem [resolvable:$true] %s364_s22 }
  0x18   : > { %s2737_s23 = smov [#allocation2]   ;;  %s2738_s15 = smov [#allocation7]  }
  0x19   : > { %s3478_s20 = scalar_select %p2865_p10, 1, 0 }
  0x1a   : > { %p2180_p11 = pneg %p2865_p10  ;;  %s350_s24 = sshll.u32 %s2737_s23, 4  ;;  %s2877_s24 = int_to_ptr.vmem [resolvable:$true] %s350_s24 }
  0x1b   : > { %s2879_s16 = sshll.u32 %s2738_s15, 4  ;;  %s3480_s2 = sld [smem:[#allocation21_spill]]  ;;  %s385_s16 = int_to_ptr.vmem [resolvable:$true] %s2879_s16 }
  0x1c   : > { %p2873_p12 = pnand %p3463_p9, %p2180_p11 }
  0x1e   : > { %p2889_p0 = pneg %p2873_p12 }
  0x21   : > { %s2548_s21 = scalar_lea.hbm %s3480_s2, 16 }
  0x22   : > { %p2549_p13 = scmp.ne.s32.totalorder %s3480_s2, %s2548_s21  ;;  %p2555_p3 = scmp.lt.u32.totalorder %s2548_s21, %s3480_s2 }
  0x24   : > { %p2551_p1 = pnand %p2889_p0, %p2549_p13 }
  0x26   : > { %p2552_p2 = pneg %p2551_p1 }
  0x28   : > { %p2557_p4 = pnand %p2555_p3, %p2552_p2 }
  0x2a   : > { %2560 = shalt.err (!%p2557_p4)
}
  0x2b   : > { %s2561_s27 = scalar_lea.vmem %s365_s22, 16  ;;  %s2568_s14 = scalar_lea.vmem %s365_s22, 32 }
  0x2c   : > { %p2562_p7 = scmp.ne.s32.totalorder %s365_s22, %s2561_s27  ;;  %p2569_p9 = scmp.lt.s32.totalorder %s365_s22, %s365_s22 }
  0x2d   : > { %p2570_p6 = scmp.lt.s32.totalorder %s2568_s14, %s2561_s27 }
  0x2e   : > { %p2564_p8 = pnand %p2562_p7, %p2889_p0 }
  0x2f   : > { %p2571_p5 = por %p2570_p6, %p2569_p9 }
  0x30   : > { %p2565_p11 = pneg %p2564_p8 }
  0x32   : > { %p2572_p10 = pnand %p2571_p5, %p2565_p11 }
  0x34   : > { %2575 = shalt.err (!%p2572_p10)
}
  0x35   : > { %2186 = dma.hbm_to_vmem [thread:$0]  (!%p2873_p12), %s3480_s2, 16, %s365_s22, [#allocation6]  }
  0x36   : > { %s2576_s15 = scalar_lea.hbm %s3445_s1, 128 }
  0x37   : > { %p2577_p13 = scmp.ne.s32.totalorder %s3445_s1, %s2576_s15  ;;  %p2583_p5 = scmp.lt.u32.totalorder %s2576_s15, %s3445_s1 }
  0x39   : > { %p2579_p1 = pnand %p2577_p13, %p2889_p0 }
  0x3b   : > { %p2580_p6 = pneg %p2579_p1 }
  0x3d   : > { %p2585_p9 = pnand %p2583_p5, %p2580_p6 }
  0x3f   : > { %2588 = shalt.err (!%p2585_p9)
}
  0x40   : > { %s2589_s22 = scalar_lea.vmem %s2877_s24, 128  ;;  %p2597_p4 = scmp.lt.s32.totalorder %s2877_s24, %s2877_s24 }
  0x41   : > { %p2590_p10 = scmp.ne.s32.totalorder %s2877_s24, %s2589_s22  ;;  %p2598_p7 = scmp.lt.s32.totalorder %s2589_s22, %s2589_s22 }
  0x43   : > { %p2592_p2 = pnand %p2590_p10, %p2889_p0  ;;  %p2599_p8 = por %p2598_p7, %p2597_p4 }
  0x45   : > { %p2593_p3 = pneg %p2592_p2 }
  0x47   : > { %p2600_p11 = pnand %p2599_p8, %p2593_p3 }
  0x49   : > { %2603 = shalt.err (!%p2600_p11)
}
  0x4a   : > { %s2739_s13 = smov 64   ;;  %s2740_s28 = smov 4  }
  0x4b   : > { %2183 = dma.hbm_to_vmem [thread:$0]  (!%p2873_p12), %s3445_s1, 128, %s2877_s24, [#allocation3], %s2739_s13, %s2739_s13, %s2740_s28  }
  0x4c   : > { %s2604_s15 = scalar_lea.hbm %s3450_s6, 16 }
  0x4d   : > { %p2605_p13 = scmp.ne.s32.totalorder %s3450_s6, %s2604_s15  ;;  %p2611_p5 = scmp.lt.u32.totalorder %s2604_s15, %s3450_s6 }
  0x4f   : > { %p2607_p1 = pnand %p2605_p13, %p2889_p0 }
  0x51   : > { %p2608_p6 = pneg %p2607_p1 }
  0x53   : > { %p2613_p9 = pnand %p2611_p5, %p2608_p6 }
  0x55   : > { %2616 = shalt.err (!%p2613_p9)
}
  0x56   : > { %s2617_s17 = scalar_lea.vmem %s385_s16, 16  ;;  %s2624_s24 = scalar_lea.vmem %s385_s16, 32 }
  0x57   : > { %p2618_p10 = scmp.ne.s32.totalorder %s385_s16, %s2617_s17  ;;  %p2625_p4 = scmp.lt.s32.totalorder %s385_s16, %s385_s16 }
  0x58   : > { %p2626_p7 = scmp.lt.s32.totalorder %s2624_s24, %s2617_s17 }
  0x59   : > { %p2620_p2 = pnand %p2618_p10, %p2889_p0 }
  0x5a   : > { %p2627_p8 = por %p2626_p7, %p2625_p4 }
  0x5b   : > { %p2621_p3 = pneg %p2620_p2 }
  0x5d   : > { %p2628_p11 = pnand %p2627_p8, %p2621_p3 }
  0x5f   : > { %2631 = shalt.err (!%p2628_p11)
}
  0x60   : > { %2189 = dma.hbm_to_vmem [thread:$0]  (!%p2873_p12), %s3450_s6, 16, %s385_s16, [#allocation6]  }
  0x61   : > { %s2741_s2 = smov [#allocation8]   ;;  %s2632_s15 = scalar_lea.hbm %s3452_s8, 16 }
  0x62   : > { %s398_s19 = sshll.u32 %s2741_s2, 4  ;;  %p2633_p13 = scmp.ne.s32.totalorder %s3452_s8, %s2632_s15  ;;  %s399_s19 = int_to_ptr.vmem [resolvable:$true] %s398_s19 }
  0x63   : > { %p2639_p5 = scmp.lt.u32.totalorder %s2632_s15, %s3452_s8 }
  0x64   : > { %p2635_p1 = pnand %p2633_p13, %p2889_p0 }
  0x66   : > { %p2636_p6 = pneg %p2635_p1 }
  0x68   : > { %p2641_p9 = pnand %p2639_p5, %p2636_p6 }
  0x6a   : > { %2644 = shalt.err (!%p2641_p9)
}
  0x6b   : > { %s2645_s16 = scalar_lea.vmem %s399_s19, 16  ;;  %s2652_s24 = scalar_lea.vmem %s399_s19, 32 }
  0x6c   : > { %p2646_p10 = scmp.ne.s32.totalorder %s399_s19, %s2645_s16  ;;  %p2653_p4 = scmp.lt.s32.totalorder %s399_s19, %s399_s19 }
  0x6d   : > { %p2654_p7 = scmp.lt.s32.totalorder %s2652_s24, %s2645_s16 }
  0x6e   : > { %p2648_p2 = pnand %p2646_p10, %p2889_p0 }
  0x6f   : > { %p2655_p8 = por %p2654_p7, %p2653_p4 }
  0x70   : > { %p2649_p3 = pneg %p2648_p2 }
  0x72   : > { %p2656_p11 = pnand %p2655_p8, %p2649_p3 }
  0x74   : > { %2659 = shalt.err (!%p2656_p11)
}
  0x75   : > { %2192 = dma.hbm_to_vmem [thread:$0]  (!%p2873_p12), %s3452_s8, 16, %s399_s19, [#allocation9]  }
  0x76   : > { %p3482_p13 = scmp.ne.s32.totalorder %s3478_s20, 0 }
  0x77   : > { %p3483_p1 = scmp.eq.s32.totalorder (!%p3482_p13), %s2837_s29, 0 }
  0x78   : > { %432 = sbr.rel (%p3482_p13) target bundleno = 1180 (0x49c), region = 72 }
  0x7f   : > { %2705 = dma.done.wait (%p3483_p1), [#allocation3], 128   ;;  %p3484_p0 = pmov %p3483_p1 }
  0x81   : > { %2707 = vsyncadd (%p3484_p0), [#allocation3], 4294967168  ;;  %p3485_p6 = pmov %p3484_p0 }
  0x82   : > { %p3486_p5 = pmov %p3484_p0 }
  0x83   : > { %2709 = dma.done.wait (%p3485_p6), [#allocation6], 32  }
  0x84   : > { %2711 = vsyncadd (%p3486_p5), [#allocation6], 4294967264  ;;  %p3487_p9 = pmov %p3484_p0 }
  0x85   : > { %p3488_p12 = pmov %p3484_p0 }
  0x86   : > { %2713 = dma.done.wait (%p3487_p9), [#allocation9], 16  }
  0x87   : > { %2715 = vsyncadd (%p3488_p12), [#allocation9], 4294967280  ;;  %s1857_s20 = sshll.u32 %s2837_s29, 4  ;;  %v2247_v0 = vld [vmem:[#allocation2] sm:$0xff]   ;;  %vm535_vm0 = vcmask 130048   ;;  %v2742_v33 = vmov 0  }
  0x88   : > { %p489_p10 = scmp.lt.s32.totalorder %s1857_s20, 31  ;;  %2000 = vmatprep.subr.bf16.mxu0 %v2247_v0  ;;  %v2248_v25 = vld [vmem:[%s3447_s3 + $0x4] ss:$8 sps:$4 sm:$0xff]   ;;  %v2250_v26 = vld [vmem:[%s3447_s3] ss:$8 sps:$4 sm:$0xff]   ;;  %798 = vmatprep.mubr.bf16.mxu1 %v2742_v33  ;;  %vm741_vm1 = vcmask 523264  }
  0x89   : > { %2001 = vmatpush3.bf16.msra.mxu0 %v2247_v0  ;;  %766 = vmatprep.subr.bf16.mxu1 %v2248_v25  ;;  %v2251_v27 = vld [vmem:[%s3447_s3 + $0x14] ss:$8 sps:$4 sm:$0xff]   ;;  %v2253_v28 = vld [vmem:[%s3447_s3 + $0x10] ss:$8 sps:$4 sm:$0xff]   ;;  %v2254_v29 = vld [vmem:[%s3447_s3 + $0x24] ss:$8 sps:$4 sm:$0xff]  }
  0x8a   : > { %s3502_s20 = smov (!%p489_p10, %s1857_s20), 31  ;;  %767 = vmatpush1.bf16.msra.mxu1 %v2250_v26  ;;  %v2256_v30 = vld [vmem:[%s3447_s3 + $0x20] ss:$8 sps:$4 sm:$0xff]   ;;  %v2257_v31 = vld [vmem:[%s3447_s3 + $0x34] ss:$8 sps:$4 sm:$0xff]   ;;  %s485_s17 = sand.u32 1, %s2726_s26  }
  0x8b   : > { %s1858_s30 = sshll.u32 %s3502_s20, 3  ;;  %768 = vmatprep.subr.bf16.mxu1 %v2251_v27  ;;  %v2259_v32 = vld [vmem:[%s3447_s3 + $0x30] ss:$8 sps:$4 sm:$0xff]   ;;  %v2260_v34 = vld [vmem:[%s3449_s5] sm:$0xff]   ;;  %v2261_v35 = vld [vmem:[%s3449_s5 + $0x8] sm:$0xff]   ;;  %s1856_s16 = sshll.u32 %s485_s17, 7 }
  0x8c   : > { %s2983_s19 = scalar_lea.vmem %s3444_s0, %s1858_s30  ;;  %2018 = vmatprep.subr.bf16.mxu0 %v2260_v34  ;;  %v3040_v36 = vld [vmem:[#allocation5] ss:$0 sm:$0xff]  ;;  %s3365_s24 = scalar_lea.vmem [#allocation10], %s1856_s16 }
  0x8d   : > { %v496_v1 = vld [vmem:[%s2983_s19] sm:$0xff]  ;;  %v497_v2 = vld [vmem:[%s2983_s19 + $0x8] sm:$0xff]  ;;  %v498_v3 = vld [vmem:[%s2983_s19 + $0x10] sm:$0xff]  ;;  %s1926_s13 = sshll.u32 %s2837_s29, 11  ;;  %s1741_s28 = sshll.u32 %s3365_s24, 4  ;;  %s3396_s28 = int_to_ptr.vmem [resolvable:$true] %s1741_s28 }
  0x8e   : > { %v512_v4 = vpack.c.bf16 %v497_v2, %v496_v1  ;;  %v499_v5 = vld [vmem:[%s2983_s19 + $0x18] sm:$0xff]  ;;  %v500_v6 = vld [vmem:[%s2983_s19 + $0x20] sm:$0xff]  ;;  %v501_v7 = vld [vmem:[%s2983_s19 + $0x28] sm:$0xff]  ;;  %769 = vmatpush1.bf16.msra.mxu1 %v2253_v28  ;;  %s3489_s23 = sld [smem:[#allocation22_spill]]  ;;  %s3403_s29 = scalar_lea.sflag [#allocation4], %s485_s17 }
  0x8f   : > { %v513_v8 = vpack.c.bf16 %v499_v5, %v498_v3  ;;  %v514_v9 = vpack.c.bf16 %v501_v7, %v500_v6  ;;  %v502_v10 = vld [vmem:[%s2983_s19 + $0x30] sm:$0xff]  ;;  %v503_v11 = vld [vmem:[%s2983_s19 + $0x38] sm:$0xff]  ;;  %v504_v12 = vld [vmem:[%s2983_s19 + $0x40] sm:$0xff]  ;;  %770 = vmatprep.subr.bf16.mxu1 %v2254_v29  ;;  %p3490_p3 = scmp.ne.s32.totalorder %s3475_s18, 0  ;;  %s2743_s25 = smov [#allocation10]  }
  0x90   : > { %2002 = vmatprep.mubr.msk.bf16.mxu0 %vm535_vm0, %v512_v4  ;;  %v505_v13 = vld [vmem:[%s2983_s19 + $0x48] sm:$0xff]  ;;  %v515_v14 = vpack.c.bf16 %v503_v11, %v502_v10  ;;  %v506_v16 = vld [vmem:[%s2983_s19 + $0x50] sm:$0xff]  ;;  %v507_v17 = vld [vmem:[%s2983_s19 + $0x58] sm:$0xff]  ;;  %s2664_s21 = sshll.u32 %s2743_s25, 4  ;;  %s2665_s21 = int_to_ptr.vmem [resolvable:$false] %s2664_s21 }
  0x91   : > { %2003 = vmatmul.mubr.msk.bf16.vlgmr.msra.gmra.mrb[0].mxu0 %vm535_vm0, %v513_v8  ;;  %v516_v15 = vpack.c.bf16 %v505_v13, %v504_v12  ;;  %v508_v18 = vld [vmem:[%s2983_s19 + $0x60] sm:$0xff]  ;;  %v509_v19 = vld [vmem:[%s2983_s19 + $0x68] sm:$0xff]  ;;  %v517_v20 = vpack.c.bf16 %v507_v17, %v506_v16  ;;  %v510_v22 = vld [vmem:[%s2983_s19 + $0x70] sm:$0xff]  ;;  %s2666_s15 = scalar_lea.vmem %s2665_s21, 4096  ;;  %p2667_p8 = scmp.lt.s32.totalorder %s3396_s28, %s2665_s21 }
  0x92   : > { %2006 = vmatprep.mubr.msk.bf16.mxu0 %vm535_vm0, %v514_v9  ;;  %v518_v21 = vpack.c.bf16 %v509_v19, %v508_v18  ;;  %v511_v23 = vld [vmem:[%s2983_s19 + $0x78] sm:$0xff]  ;;  %771 = vmatpush1.bf16.msra.mxu1 %v2256_v30  ;;  %v2262_v29 = vld [vmem:[%s3449_s5 + $0x10] sm:$0xff]   ;;  %s2660_s19 = scalar_lea.vmem %s3396_s28, 2048 }
  0x93   : > { %v519_v24 = vpack.c.bf16 %v511_v23, %v510_v22  ;;  %772 = vmatprep.subr.bf16.mxu1 %v2257_v31  ;;  %2019 = vmatpush3.bf16.msra.mxu0 %v2260_v34  ;;  %v2263_v30 = vld [vmem:[%s3449_s5 + $0x18] sm:$0xff]   ;;  %v2264_v31 = vld [vmem:[%s3449_s5 + $0x20] sm:$0xff]   ;;  %p2661_p2 = scmp.ne.s32.totalorder %s3396_s28, %s2660_s19  ;;  %p2668_p11 = scmp.lt.s32.totalorder %s2666_s15, %s2660_s19 }
  0x94   : > { %2020 = vmatprep.subr.bf16.mxu0 %v2261_v35  ;;  %v2267_v34 = vld [vmem:[%s3449_s5 + $0x38] sm:$0xff]   ;;  %s3394_s2 = scalar_lea.hbm %s3489_s23, %s1926_s13 }
  0x95   : > { %p2662_p4 = pnand %p2661_p2, %p3490_p3  ;;  %p2669_p13 = por %p2668_p11, %p2667_p8 }
  0x96   : > { %773 = vmatpush1.bf16.msra.mxu1 %v2259_v32  ;;  %v2265_v32 = vld [vmem:[%s3449_s5 + $0x28] sm:$0xff]  }
  0x97   : > { %2021 = vmatpush3.bf16.msra.mxu0 %v2261_v35  ;;  %v3094_v35 = vld [vmem:[%s3451_s7] sm:$0xff]   ;;  %p2663_p7 = pneg %p2662_p4 }
  0x98   : > { %2022 = vmatprep.subr.bf16.mxu0 %v2262_v29 }
  0x99   : > { %2007 = vmatmul.mubr.msk.bf16.gmra.mrb[4].mxu0 %vm535_vm0, %v515_v14  ;;  %p2670_p1 = pnand %p2669_p13, %p2663_p7 }
  0x9a   : > { %2010 = vmatprep.mubr.msk.bf16.mxu0 %vm535_vm0, %v516_v15 }
  0x9b   : > { %2023 = vmatpush3.bf16.msra.mxu0 %v2262_v29 }
  0x9c   : > { %2024 = vmatprep.subr.bf16.mxu0 %v2263_v30 }
  0x9f   : > { %2025 = vmatpush3.bf16.msra.mxu0 %v2263_v30 }
  0xa0   : > { %2026 = vmatprep.subr.bf16.mxu0 %v2264_v31 }
  0xa1   : > { %2011 = vmatmul.mubr.msk.bf16.gmra.mrb[8].mxu0 %vm535_vm0, %v517_v20 }
  0xa2   : > { %2014 = vmatprep.mubr.msk.bf16.mxu0 %vm535_vm0, %v518_v21 }
  0xa3   : > { %2027 = vmatpush3.bf16.msra.mxu0 %v2264_v31 }
  0xa4   : > { %2028 = vmatprep.subr.bf16.mxu0 %v2265_v32 }
  0xa7   : > { %2029 = vmatpush3.bf16.msra.mxu0 %v2265_v32 }
  0xa9   : > { %2015 = vmatmul.mubr.msk.bf16.gmra.mrb[12].mxu0 %vm535_vm0, %v519_v24 }
 0x164   : > { %v2004_v37 = vpop.f32.mrb[0].mxu0 }
 0x165   : > { %v603_v38 = vadd.f32 %v2004_v37, %v3040_v36  ;;  %v594_v39 = vpop.f32.mrb[1].mxu0  ;;  %v2277_v37 = vld [vmem:[%s3453_s9 + $0x8] sm:$0xff]  }
 0x166   : > { %v595_v40 = vadd.f32 %v3040_v36, %v594_v39  ;;  %v2005_v41 = vpop.f32.mrb[2].mxu0  ;;  %v691_v39 = vlaneseq }
 0x167   : > { %2292 = vtanh.f32 %v603_v38  ;;  %v606_v42 = vadd.f32 %v2005_v41, %v3040_v36  ;;  %v597_v43 = vpop.f32.mrb[3].mxu0  ;;  %v2278_v38 = vld [vmem:[%s3453_s9 + $0x10] sm:$0xff]  }
 0x168   : > { %2294 = vtanh.f32 %v595_v40  ;;  %v598_v44 = vadd.f32 %v3040_v36, %v597_v43  ;;  %v692_v40 = vshrl.u32 %v691_v39, 7 }
 0x169   : > { %2296 = vtanh.f32 %v606_v42  ;;  %v689_v42 = vld [vmem:[%s3448_s4] sm:$0x3] }
 0x16a   : > { %2298 = vtanh.f32 %v598_v44  ;;  %v693_v41 = vsub.s32 0, %v692_v40  ;;  %v697_v43 = vsub.s32 1, %v692_v40 }
 0x16c   : > { %v2008_v45 = vpop.f32.mrb[4].mxu0  ;;  %v3109_v44 = vrot.slane %v689_v42, %v693_v41 }
 0x16d   : > { %v619_v46 = vadd.f32 %v2008_v45, %v3040_v36  ;;  %v610_v47 = vpop.f32.mrb[5].mxu0  ;;  %v3111_v45 = vrot.slane %v689_v42, %v697_v43  ;;  %v2272_v43 = vld [vmem:[%s3451_s7 + $0x20] sm:$0xff]  }
 0x16e   : > { %v611_v48 = vadd.f32 %v3040_v36, %v610_v47  ;;  %v2009_v49 = vpop.f32.mrb[6].mxu0 }
 0x16f   : > { %2300 = vtanh.f32 %v619_v46  ;;  %v622_v50 = vadd.f32 %v2009_v49, %v3040_v36  ;;  %v613_v51 = vpop.f32.mrb[7].mxu0 }
 0x170   : > { %2302 = vtanh.f32 %v611_v48  ;;  %v614_v52 = vadd.f32 %v3040_v36, %v613_v51 }
 0x171   : > { %v2293_v53 = vpop.eup %2292  ;;  %2304 = vtanh.f32 %v622_v50 }
 0x172   : > { %v2295_v54 = vpop.eup %2294  ;;  %2306 = vtanh.f32 %v614_v52 }
 0x173   : > { %v2297_v55 = vpop.eup %2296 }
 0x174   : > { %v2299_v56 = vpop.eup %2298  ;;  %v674_v57 = vpack.c.bf16 %v2297_v55, %v2293_v53  ;;  %v2012_v58 = vpop.f32.mrb[8].mxu0 }
 0x175   : > { %v673_v59 = vpack.c.bf16 %v2299_v56, %v2295_v54  ;;  %v635_v60 = vadd.f32 %v2012_v58, %v3040_v36  ;;  %v626_v61 = vpop.f32.mrb[9].mxu0 }
 0x176   : > { %v627_v62 = vadd.f32 %v3040_v36, %v626_v61  ;;  %v2013_v63 = vpop.f32.mrb[10].mxu0 }
 0x177   : > { %1877 = vmatmul.mubr.msk.bf16.vlgmr.msra.gmra.mrb[0].mxu1 %vm741_vm1, %v673_v59  ;;  %2308 = vtanh.f32 %v635_v60  ;;  %v638_v0 = vadd.f32 %v2013_v63, %v3040_v36  ;;  %v629_v1 = vpop.f32.mrb[11].mxu0 }
 0x178   : > { %808 = vmatprep.mubr.bf16.mxu1 %v2742_v33  ;;  %2310 = vtanh.f32 %v627_v62  ;;  %v630_v2 = vadd.f32 %v3040_v36, %v629_v1 }
 0x179   : > { %v2301_v3 = vpop.eup %2300  ;;  %2312 = vtanh.f32 %v638_v0 }
 0x17a   : > { %v2303_v4 = vpop.eup %2302  ;;  %2314 = vtanh.f32 %v630_v2 }
 0x17b   : > { %v2305_v5 = vpop.eup %2304 }
 0x17c   : > { %v2307_v6 = vpop.eup %2306  ;;  %v676_v7 = vpack.c.bf16 %v2305_v5, %v2301_v3  ;;  %v2016_v8 = vpop.f32.mrb[12].mxu0 }
 0x17d   : > { %v675_v9 = vpack.c.bf16 %v2307_v6, %v2303_v4  ;;  %v651_v10 = vadd.f32 %v2016_v8, %v3040_v36  ;;  %v642_v11 = vpop.f32.mrb[13].mxu0 }
 0x17e   : > { %v643_v12 = vadd.f32 %v3040_v36, %v642_v11  ;;  %v2017_v13 = vpop.f32.mrb[14].mxu0 }
 0x17f   : > { %1878 = vmatmul.mubr.msk.bf16.gmra.mrb[4].mxu1 %vm741_vm1, %v674_v57  ;;  %2316 = vtanh.f32 %v651_v10  ;;  %v654_v14 = vadd.f32 %v2017_v13, %v3040_v36  ;;  %v645_v15 = vpop.f32.mrb[15].mxu0 }
 0x180   : > { %818 = vmatprep.mubr.bf16.mxu1 %v2742_v33  ;;  %2318 = vtanh.f32 %v643_v12  ;;  %v646_v16 = vadd.f32 %v3040_v36, %v645_v15  ;;  %v2276_v36 = vld [vmem:[%s3453_s9] sm:$0xff]  }
 0x181   : > { %v2309_v17 = vpop.eup %2308  ;;  %2320 = vtanh.f32 %v654_v14  ;;  %2082 = vmatprep.subr.bf16.mxu1 %v2276_v36 }
 0x182   : > { %v2311_v18 = vpop.eup %2310  ;;  %2322 = vtanh.f32 %v646_v16  ;;  %2083 = vmatpush3.bf16.msra.mxu1 %v2276_v36 }
 0x183   : > { %v2313_v19 = vpop.eup %2312  ;;  %2084 = vmatprep.subr.bf16.mxu1 %v2277_v37 }
 0x184   : > { %v2315_v20 = vpop.eup %2314  ;;  %v678_v21 = vpack.c.bf16 %v2313_v19, %v2309_v17 }
 0x185   : > { %v677_v22 = vpack.c.bf16 %v2315_v20, %v2311_v18  ;;  %v2269_v18 = vld [vmem:[%s3451_s7 + $0x8] sm:$0xff]  }
 0x186   : > { %2085 = vmatpush3.bf16.msra.mxu1 %v2277_v37 }
 0x187   : > { %1879 = vmatmul.mubr.msk.bf16.gmra.mrb[8].mxu1 %vm741_vm1, %v675_v9  ;;  %2086 = vmatprep.subr.bf16.mxu1 %v2278_v38 }
 0x188   : > { %828 = vmatprep.mubr.bf16.mxu1 %v2742_v33 }
 0x189   : > { %v2317_v23 = vpop.eup %2316 }
 0x18a   : > { %v2319_v24 = vpop.eup %2318  ;;  %2087 = vmatpush3.bf16.msra.mxu1 %v2278_v38 }
 0x18b   : > { %v2321_v25 = vpop.eup %2320 }
 0x18c   : > { %v2323_v26 = vpop.eup %2322  ;;  %v680_v27 = vpack.c.bf16 %v2321_v25, %v2317_v23 }
 0x18d   : > { %v679_v28 = vpack.c.bf16 %v2323_v26, %v2319_v24 }
 0x18f   : > { %1880 = vmatmul.mubr.msk.bf16.gmra.mrb[12].mxu1 %vm741_vm1, %v676_v7 }
 0x190   : > { %838 = vmatprep.mubr.bf16.mxu1 %v2742_v33 }
 0x197   : > { %1881 = vmatmul.mubr.msk.bf16.gmra.mrb[16].mxu1 %vm741_vm1, %v677_v22 }
 0x198   : > { %848 = vmatprep.mubr.bf16.mxu1 %v2742_v33 }
 0x19f   : > { %1882 = vmatmul.mubr.msk.bf16.gmra.mrb[20].mxu1 %vm741_vm1, %v678_v21 }
 0x1a0   : > { %858 = vmatprep.mubr.bf16.mxu1 %v2742_v33 }
 0x1a7   : > { %1883 = vmatmul.mubr.msk.bf16.gmra.mrb[24].mxu1 %vm741_vm1, %v679_v28 }
 0x1a8   : > { %868 = vmatprep.mubr.bf16.mxu1 %v2742_v33  ;;  %v2266_v33 = vld [vmem:[%s3449_s5 + $0x30] sm:$0xff]  }
 0x1a9   : > { %2030 = vmatprep.subr.bf16.mxu0 %v2266_v33 }
 0x1aa   : > { %2031 = vmatpush3.bf16.msra.mxu0 %v2266_v33 }
 0x1ab   : > { %2032 = vmatprep.subr.bf16.mxu0 %v2267_v34 }
 0x1ae   : > { %2033 = vmatpush3.bf16.msra.mxu0 %v2267_v34  ;;  %v2271_v34 = vld [vmem:[%s3451_s7 + $0x18] sm:$0xff]  }
 0x1af   : > { %1884 = vmatmul.mubr.msk.bf16.gmra.mrb[28].mxu1 %vm741_vm1, %v680_v27  ;;  %2050 = vmatprep.subr.bf16.mxu0 %v3094_v35  ;;  %v2270_v27 = vld [vmem:[%s3451_s7 + $0x10] sm:$0xff]  }
 0x24a   : > { %v800_v46 = vpop.f32.mrb[0].mxu1 }
 0x24b   : > { %v801_v47 = vadd.f32 %v800_v46, %v3109_v44  ;;  %v802_v48 = vpop.f32.mrb[1].mxu1 }
 0x24c   : > { %v803_v49 = vadd.f32 %v802_v48, %v3111_v45  ;;  %v804_v50 = vpop.f32.mrb[2].mxu1 }
 0x24d   : > { %2324 = vtanh.f32 %v801_v47  ;;  %v805_v51 = vadd.f32 %v804_v50, %v3109_v44  ;;  %v806_v52 = vpop.f32.mrb[3].mxu1 }
 0x24e   : > { %2326 = vtanh.f32 %v803_v49  ;;  %v807_v53 = vadd.f32 %v806_v52, %v3111_v45  ;;  %v2273_v52 = vld [vmem:[%s3451_s7 + $0x28] sm:$0xff]  }
 0x24f   : > { %2328 = vtanh.f32 %v805_v51 }
 0x250   : > { %2330 = vtanh.f32 %v807_v53 }
 0x252   : > { %v810_v54 = vpop.f32.mrb[4].mxu1 }
 0x253   : > { %v811_v55 = vadd.f32 %v810_v54, %v3109_v44  ;;  %v812_v56 = vpop.f32.mrb[5].mxu1 }
 0x254   : > { %v813_v57 = vadd.f32 %v812_v56, %v3111_v45  ;;  %v814_v58 = vpop.f32.mrb[6].mxu1 }
 0x255   : > { %2332 = vtanh.f32 %v811_v55  ;;  %v815_v59 = vadd.f32 %v814_v58, %v3109_v44  ;;  %v816_v60 = vpop.f32.mrb[7].mxu1 }
 0x256   : > { %2334 = vtanh.f32 %v813_v57  ;;  %v817_v61 = vadd.f32 %v816_v60, %v3111_v45 }
 0x257   : > { %v2325_v62 = vpop.eup %2324  ;;  %2336 = vtanh.f32 %v815_v59 }
 0x258   : > { %v3121_v63 = vpop.eup %2326  ;;  %2338 = vtanh.f32 %v817_v61  ;;  %v2274_v61 = vld [vmem:[%s3451_s7 + $0x30] sm:$0xff]  }
 0x259   : > { %v2329_v0 = vpop.eup %2328 }
 0x25a   : > { %v3123_v1 = vpop.eup %2330  ;;  %v820_v2 = vpop.f32.mrb[8].mxu1  ;;  %v911_v3 = vpack.c.bf16 %v2329_v0, %v2325_v62 }
 0x25b   : > { %v821_v4 = vadd.f32 %v820_v2, %v3109_v44  ;;  %v822_v5 = vpop.f32.mrb[9].mxu1  ;;  %v1103_v6 = vpack.c.bf16 %v3123_v1, %v3121_v63  ;;  %v2281_v63 = vld [vmem:[%s3453_s9 + $0x28] sm:$0xff]   ;;  %v2282_v1 = vld [vmem:[%s3453_s9 + $0x30] sm:$0xff]  }
 0x25c   : > { %v823_v7 = vadd.f32 %v822_v5, %v3111_v45  ;;  %v824_v8 = vpop.f32.mrb[10].mxu1  ;;  %2034 = vmatprep.mubr.bf16.mxu0 %v911_v3 }
 0x25d   : > { %2340 = vtanh.f32 %v821_v4  ;;  %v825_v9 = vadd.f32 %v824_v8, %v3109_v44  ;;  %v826_v10 = vpop.f32.mrb[11].mxu1 }
 0x25e   : > { %2342 = vtanh.f32 %v823_v7  ;;  %v827_v11 = vadd.f32 %v826_v10, %v3111_v45  ;;  %v2275_v7 = vld [vmem:[%s3451_s7 + $0x38] sm:$0xff]  }
 0x25f   : > { %v2333_v12 = vpop.eup %2332  ;;  %2344 = vtanh.f32 %v825_v9 }
 0x260   : > { %v3131_v13 = vpop.eup %2334  ;;  %2346 = vtanh.f32 %v827_v11 }
 0x261   : > { %v2337_v14 = vpop.eup %2336 }
 0x262   : > { %v3133_v15 = vpop.eup %2338  ;;  %v830_v16 = vpop.f32.mrb[12].mxu1  ;;  %v912_v17 = vpack.c.bf16 %v2337_v14, %v2333_v12 }
 0x263   : > { %v831_v19 = vadd.f32 %v830_v16, %v3109_v44  ;;  %v832_v20 = vpop.f32.mrb[13].mxu1  ;;  %v1104_v21 = vpack.c.bf16 %v3133_v15, %v3131_v13  ;;  %v2284_v13 = vld [vmem:[%s3455_s11] sm:$0xff]   ;;  %v2285_v15 = vld [vmem:[%s3455_s11 + $0x8] sm:$0xff]  }
 0x264   : > { %v833_v22 = vadd.f32 %v832_v20, %v3111_v45  ;;  %v834_v23 = vpop.f32.mrb[14].mxu1  ;;  %2035 = vmatmul.mubr.bf16.vlgmr.msra.gmra.mrb[16].mxu0 %v912_v17 }
 0x265   : > { %2348 = vtanh.f32 %v831_v19  ;;  %v835_v24 = vadd.f32 %v834_v23, %v3109_v44  ;;  %v836_v25 = vpop.f32.mrb[15].mxu1  ;;  %2051 = vmatpush3.bf16.msra.mxu0 %v3094_v35 }
 0x266   : > { %2350 = vtanh.f32 %v833_v22  ;;  %v837_v26 = vadd.f32 %v836_v25, %v3111_v45  ;;  %2052 = vmatprep.subr.bf16.mxu0 %v2269_v18 }
 0x267   : > { %v2341_v28 = vpop.eup %2340  ;;  %2352 = vtanh.f32 %v835_v24 }
 0x268   : > { %v3148_v29 = vpop.eup %2342  ;;  %2354 = vtanh.f32 %v837_v26 }
 0x269   : > { %v2345_v30 = vpop.eup %2344  ;;  %2053 = vmatpush3.bf16.msra.mxu0 %v2269_v18 }
 0x26a   : > { %v3150_v31 = vpop.eup %2346  ;;  %v840_v32 = vpop.f32.mrb[16].mxu1  ;;  %v913_v33 = vpack.c.bf16 %v2345_v30, %v2341_v28  ;;  %2054 = vmatprep.subr.bf16.mxu0 %v2270_v27 }
 0x26b   : > { %v841_v35 = vadd.f32 %v840_v32, %v3109_v44  ;;  %v842_v36 = vpop.f32.mrb[17].mxu1  ;;  %v1105_v37 = vpack.c.bf16 %v3150_v31, %v3148_v29  ;;  %v3230_v29 = vld [vmem:[%s3455_s11 + $0x18] sm:$0xff]   ;;  %v3237_v31 = vld [vmem:[%s3455_s11 + $0x20] sm:$0xff]  }
 0x26c   : > { %v843_v38 = vadd.f32 %v842_v36, %v3111_v45  ;;  %v844_v39 = vpop.f32.mrb[18].mxu1  ;;  %2038 = vmatprep.mubr.bf16.mxu0 %v913_v33 }
 0x26d   : > { %2356 = vtanh.f32 %v841_v35  ;;  %v845_v40 = vadd.f32 %v844_v39, %v3109_v44  ;;  %v846_v41 = vpop.f32.mrb[19].mxu1  ;;  %2055 = vmatpush3.bf16.msra.mxu0 %v2270_v27 }
 0x26e   : > { %2358 = vtanh.f32 %v843_v38  ;;  %v847_v42 = vadd.f32 %v846_v41, %v3111_v45  ;;  %2056 = vmatprep.subr.bf16.mxu0 %v2271_v34 }
 0x26f   : > { %v2349_v46 = vpop.eup %2348  ;;  %2360 = vtanh.f32 %v845_v40 }
 0x270   : > { %v3164_v47 = vpop.eup %2350  ;;  %2362 = vtanh.f32 %v847_v42 }
 0x271   : > { %v2353_v48 = vpop.eup %2352  ;;  %2057 = vmatpush3.bf16.msra.mxu0 %v2271_v34 }
 0x272   : > { %v3166_v49 = vpop.eup %2354  ;;  %v850_v50 = vpop.f32.mrb[20].mxu1  ;;  %v914_v51 = vpack.c.bf16 %v2353_v48, %v2349_v46  ;;  %2058 = vmatprep.subr.bf16.mxu0 %v2272_v43 }
 0x273   : > { %v851_v53 = vadd.f32 %v850_v50, %v3109_v44  ;;  %v852_v54 = vpop.f32.mrb[21].mxu1  ;;  %v1106_v55 = vpack.c.bf16 %v3166_v49, %v3164_v47  ;;  %v3251_v47 = vld [vmem:[%s3455_s11 + $0x30] sm:$0xff]   ;;  %v3258_v49 = vld [vmem:[%s3455_s11 + $0x38] sm:$0xff]  }
 0x274   : > { %v853_v56 = vadd.f32 %v852_v54, %v3111_v45  ;;  %v854_v57 = vpop.f32.mrb[22].mxu1  ;;  %2039 = vmatmul.mubr.bf16.gmra.mrb[20].mxu0 %v914_v51 }
 0x275   : > { %2364 = vtanh.f32 %v851_v53  ;;  %v855_v58 = vadd.f32 %v854_v57, %v3109_v44  ;;  %v856_v59 = vpop.f32.mrb[23].mxu1  ;;  %2059 = vmatpush3.bf16.msra.mxu0 %v2272_v43 }
 0x276   : > { %2366 = vtanh.f32 %v853_v56  ;;  %v857_v60 = vadd.f32 %v856_v59, %v3111_v45  ;;  %2060 = vmatprep.subr.bf16.mxu0 %v2273_v52 }
 0x277   : > { %v2357_v62 = vpop.eup %2356  ;;  %2368 = vtanh.f32 %v855_v58 }
 0x278   : > { %v2359_v0 = vpop.eup %2358  ;;  %2370 = vtanh.f32 %v857_v60 }
 0x279   : > { %v2361_v2 = vpop.eup %2360  ;;  %2061 = vmatpush3.bf16.msra.mxu0 %v2273_v52  ;;  %v3262_v52 = vld [vmem:[#allocation7] ss:$0 sm:$0xff] }
 0x27a   : > { %v2363_v3 = vpop.eup %2362  ;;  %v860_v4 = vpop.f32.mrb[24].mxu1  ;;  %v915_v5 = vpack.c.bf16 %v2361_v2, %v2357_v62  ;;  %2062 = vmatprep.subr.bf16.mxu0 %v2274_v61 }
 0x27b   : > { %v861_v8 = vadd.f32 %v860_v4, %v3109_v44  ;;  %v862_v9 = vpop.f32.mrb[25].mxu1  ;;  %v1107_v10 = vpack.c.bf16 %v2363_v3, %v2359_v0 }
 0x27c   : > { %v863_v11 = vadd.f32 %v862_v9, %v3111_v45  ;;  %v864_v12 = vpop.f32.mrb[26].mxu1  ;;  %2042 = vmatprep.mubr.bf16.mxu0 %v915_v5 }
 0x27d   : > { %2372 = vtanh.f32 %v861_v8  ;;  %v865_v14 = vadd.f32 %v864_v12, %v3109_v44  ;;  %v866_v16 = vpop.f32.mrb[27].mxu1  ;;  %2063 = vmatpush3.bf16.msra.mxu0 %v2274_v61 }
 0x27e   : > { %2374 = vtanh.f32 %v863_v11  ;;  %v867_v17 = vadd.f32 %v866_v16, %v3111_v45  ;;  %2064 = vmatprep.subr.bf16.mxu0 %v2275_v7 }
 0x27f   : > { %v2365_v18 = vpop.eup %2364  ;;  %2376 = vtanh.f32 %v865_v14 }
 0x280   : > { %v2367_v19 = vpop.eup %2366  ;;  %2378 = vtanh.f32 %v867_v17 }
 0x281   : > { %v2369_v20 = vpop.eup %2368  ;;  %2065 = vmatpush3.bf16.msra.mxu0 %v2275_v7 }
 0x282   : > { %v2371_v22 = vpop.eup %2370  ;;  %v870_v23 = vpop.f32.mrb[28].mxu1  ;;  %v916_v24 = vpack.c.bf16 %v2369_v20, %v2365_v18  ;;  %2114 = vmatprep.subr.bf16.mxu0 %v2284_v13 }
 0x283   : > { %v871_v25 = vadd.f32 %v870_v23, %v3109_v44  ;;  %v872_v26 = vpop.f32.mrb[29].mxu1  ;;  %v1108_v27 = vpack.c.bf16 %v2371_v22, %v2367_v19 }
 0x284   : > { %v873_v28 = vadd.f32 %v872_v26, %v3111_v45  ;;  %v874_v30 = vpop.f32.mrb[30].mxu1  ;;  %2043 = vmatmul.mubr.bf16.gmra.mrb[24].mxu0 %v916_v24 }
 0x285   : > { %2380 = vtanh.f32 %v871_v25  ;;  %v875_v32 = vadd.f32 %v874_v30, %v3109_v44  ;;  %v876_v33 = vpop.f32.mrb[31].mxu1  ;;  %v2279_v44 = vld [vmem:[%s3453_s9 + $0x18] sm:$0xff]  }
 0x286   : > { %2382 = vtanh.f32 %v873_v28  ;;  %v877_v34 = vadd.f32 %v876_v33, %v3111_v45  ;;  %2088 = vmatprep.subr.bf16.mxu1 %v2279_v44  ;;  %v2280_v45 = vld [vmem:[%s3453_s9 + $0x20] sm:$0xff]  }
 0x287   : > { %v2373_v35 = vpop.eup %2372  ;;  %2384 = vtanh.f32 %v875_v32  ;;  %2089 = vmatpush3.bf16.msra.mxu1 %v2279_v44  ;;  %v3290_v44 = vld [vmem:[#allocation8] ss:$0 sm:$0xff] }
 0x288   : > { %v2375_v36 = vpop.eup %2374  ;;  %2386 = vtanh.f32 %v877_v34  ;;  %2090 = vmatprep.subr.bf16.mxu1 %v2280_v45 }
 0x289   : > { %v2377_v38 = vpop.eup %2376 }
 0x28a   : > { %v2379_v39 = vpop.eup %2378  ;;  %v917_v40 = vpack.c.bf16 %v2377_v38, %v2373_v35 }
 0x28b   : > { %v1109_v41 = vpack.c.bf16 %v2379_v39, %v2375_v36  ;;  %2091 = vmatpush3.bf16.msra.mxu1 %v2280_v45 }
 0x28c   : > { %2046 = vmatprep.mubr.bf16.mxu0 %v917_v40  ;;  %2092 = vmatprep.subr.bf16.mxu1 %v2281_v63 }
 0x28f   : > { %v2381_v42 = vpop.eup %2380  ;;  %2093 = vmatpush3.bf16.msra.mxu1 %v2281_v63 }
 0x290   : > { %v2383_v43 = vpop.eup %2382  ;;  %2094 = vmatprep.subr.bf16.mxu1 %v2282_v1 }
 0x291   : > { %v2385_v46 = vpop.eup %2384 }
 0x292   : > { %v2387_v48 = vpop.eup %2386  ;;  %v918_v50 = vpack.c.bf16 %v2385_v46, %v2381_v42 }
 0x293   : > { %v1110_v51 = vpack.c.bf16 %v2387_v48, %v2383_v43  ;;  %2095 = vmatpush3.bf16.msra.mxu1 %v2282_v1 }
 0x294   : > { %2047 = vmatmul.mubr.bf16.gmra.mrb[28].mxu0 %v918_v50 }
 0x295   : > { %2066 = vmatprep.mubr.bf16.mxu0 %v1103_v6  ;;  %v2283_v6 = vld [vmem:[%s3453_s9 + $0x38] sm:$0xff]  }
 0x296   : > { %2096 = vmatprep.subr.bf16.mxu1 %v2283_v6 }
 0x297   : > { %2097 = vmatpush3.bf16.msra.mxu1 %v2283_v6 }
 0x298   : > { %2146 = vmatprep.subr.bf16.mxu1 %v2284_v13 }
 0x29c   : > { %2067 = vmatmul.mubr.bf16.vlgmr.msra.gmra.mrb[32].mxu0 %v1104_v21  ;;  %v2286_v21 = vld [vmem:[%s3455_s11 + $0x10] sm:$0xff]  }
 0x29d   : > { %2070 = vmatprep.mubr.bf16.mxu0 %v1105_v37  ;;  %2115 = vmatpush3.bf16.msra.mxu0 %v2284_v13  ;;  %v3244_v37 = vld [vmem:[%s3455_s11 + $0x28] sm:$0xff]  }
 0x29e   : > { %2116 = vmatprep.subr.bf16.mxu0 %v2285_v15 }
 0x2a1   : > { %2117 = vmatpush3.bf16.msra.mxu0 %v2285_v15 }
 0x2a2   : > { %2118 = vmatprep.subr.bf16.mxu0 %v2286_v21 }
 0x2a4   : > { %2071 = vmatmul.mubr.bf16.gmra.mrb[36].mxu0 %v1106_v55 }
 0x2a5   : > { %2074 = vmatprep.mubr.bf16.mxu0 %v1107_v10  ;;  %2119 = vmatpush3.bf16.msra.mxu0 %v2286_v21 }
 0x2a6   : > { %2120 = vmatprep.subr.bf16.mxu0 %v3230_v29 }
 0x2a9   : > { %2121 = vmatpush3.bf16.msra.mxu0 %v3230_v29 }
 0x2aa   : > { %2122 = vmatprep.subr.bf16.mxu0 %v3237_v31 }
 0x2ac   : > { %2075 = vmatmul.mubr.bf16.gmra.mrb[40].mxu0 %v1108_v27 }
 0x2ad   : > { %2078 = vmatprep.mubr.bf16.mxu0 %v1109_v41  ;;  %2123 = vmatpush3.bf16.msra.mxu0 %v3237_v31 }
 0x2ae   : > { %2124 = vmatprep.subr.bf16.mxu0 %v3244_v37 }
 0x2b1   : > { %2125 = vmatpush3.bf16.msra.mxu0 %v3244_v37 }
 0x2b2   : > { %2126 = vmatprep.subr.bf16.mxu0 %v3251_v47 }
 0x2b4   : > { %2079 = vmatmul.mubr.bf16.gmra.mrb[44].mxu0 %v1110_v51 }
 0x2b5   : > { %2127 = vmatpush3.bf16.msra.mxu0 %v3251_v47 }
 0x2b6   : > { %2128 = vmatprep.subr.bf16.mxu0 %v3258_v49 }
 0x2b9   : > { %2129 = vmatpush3.bf16.msra.mxu0 %v3258_v49 }
 0x337   : > { %v2036_v53 = vpop.f32.mrb[16].mxu0 }
 0x338   : > { %v1033_v54 = vadd.f32 %v2036_v53, %v3262_v52  ;;  %v1024_v55 = vpop.f32.mrb[17].mxu0 }
 0x339   : > { %v1025_v56 = vadd.f32 %v3262_v52, %v1024_v55  ;;  %v2037_v57 = vpop.f32.mrb[18].mxu0 }
 0x33a   : > { %2388 = vtanh.f32 %v1033_v54  ;;  %v1036_v58 = vadd.f32 %v2037_v57, %v3262_v52  ;;  %v1027_v59 = vpop.f32.mrb[19].mxu0 }
 0x33b   : > { %2390 = vtanh.f32 %v1025_v56  ;;  %v1028_v60 = vadd.f32 %v3262_v52, %v1027_v59 }
 0x33c   : > { %2392 = vtanh.f32 %v1036_v58 }
 0x33d   : > { %2394 = vtanh.f32 %v1028_v60 }
 0x344   : > { %v2389_v61 = vpop.eup %2388 }
 0x345   : > { %v2391_v62 = vpop.eup %2390 }
 0x346   : > { %v2393_v0 = vpop.eup %2392 }
 0x347   : > { %v2395_v2 = vpop.eup %2394  ;;  %v2040_v3 = vpop.f32.mrb[20].mxu0  ;;  %v1296_v4 = vpack.c.bf16 %v2393_v0, %v2389_v61 }
 0x348   : > { %v1049_v5 = vadd.f32 %v2040_v3, %v3262_v52  ;;  %v1040_v7 = vpop.f32.mrb[21].mxu0  ;;  %v1295_v8 = vpack.c.bf16 %v2395_v2, %v2391_v62 }
 0x349   : > { %v1041_v9 = vadd.f32 %v3262_v52, %v1040_v7  ;;  %v2041_v10 = vpop.f32.mrb[22].mxu0 }
 0x34a   : > { %2396 = vtanh.f32 %v1049_v5  ;;  %v1052_v11 = vadd.f32 %v2041_v10, %v3262_v52  ;;  %v1043_v12 = vpop.f32.mrb[23].mxu0  ;;  %2098 = vmatprep.mubr.bf16.mxu1 %v1295_v8 }
 0x34b   : > { %2398 = vtanh.f32 %v1041_v9  ;;  %v1044_v14 = vadd.f32 %v3262_v52, %v1043_v12  ;;  %2099 = vmatmul.mubr.bf16.vlgmr.msra.gmra.mrb[32].mxu1 %v1296_v4 }
 0x34c   : > { %2400 = vtanh.f32 %v1052_v11  ;;  %2154 = vmatpush3.bf16.msra.mxu1 %v2284_v13 }
 0x34d   : > { %2402 = vtanh.f32 %v1044_v14  ;;  %2147 = vmatprep.subr.bf16.mxu1 %v2285_v15 }
 0x350   : > { %2155 = vmatpush3.bf16.msra.mxu1 %v2285_v15 }
 0x351   : > { %2148 = vmatprep.subr.bf16.mxu1 %v2286_v21 }
 0x354   : > { %v2397_v16 = vpop.eup %2396  ;;  %2156 = vmatpush3.bf16.msra.mxu1 %v2286_v21 }
 0x355   : > { %v2399_v17 = vpop.eup %2398  ;;  %2149 = vmatprep.subr.bf16.mxu1 %v3230_v29 }
 0x356   : > { %v2401_v18 = vpop.eup %2400 }
 0x357   : > { %v2403_v19 = vpop.eup %2402  ;;  %v2044_v20 = vpop.f32.mrb[24].mxu0  ;;  %v1298_v22 = vpack.c.bf16 %v2401_v18, %v2397_v16 }
 0x358   : > { %v1065_v23 = vadd.f32 %v2044_v20, %v3262_v52  ;;  %v1056_v24 = vpop.f32.mrb[25].mxu0  ;;  %v1297_v25 = vpack.c.bf16 %v2403_v19, %v2399_v17  ;;  %2157 = vmatpush3.bf16.msra.mxu1 %v3230_v29 }
 0x359   : > { %v1057_v26 = vadd.f32 %v3262_v52, %v1056_v24  ;;  %v2045_v27 = vpop.f32.mrb[26].mxu0  ;;  %2150 = vmatprep.subr.bf16.mxu1 %v3237_v31 }
 0x35a   : > { %2404 = vtanh.f32 %v1065_v23  ;;  %v1068_v28 = vadd.f32 %v2045_v27, %v3262_v52  ;;  %v1059_v30 = vpop.f32.mrb[27].mxu0  ;;  %2102 = vmatprep.mubr.bf16.mxu1 %v1297_v25 }
 0x35b   : > { %2406 = vtanh.f32 %v1057_v26  ;;  %v1060_v32 = vadd.f32 %v3262_v52, %v1059_v30  ;;  %2103 = vmatmul.mubr.bf16.gmra.mrb[36].mxu1 %v1298_v22 }
 0x35c   : > { %2408 = vtanh.f32 %v1068_v28  ;;  %2158 = vmatpush3.bf16.msra.mxu1 %v3237_v31 }
 0x35d   : > { %2410 = vtanh.f32 %v1060_v32  ;;  %2151 = vmatprep.subr.bf16.mxu1 %v3244_v37 }
 0x360   : > { %2159 = vmatpush3.bf16.msra.mxu1 %v3244_v37 }
 0x361   : > { %2152 = vmatprep.subr.bf16.mxu1 %v3251_v47 }
 0x364   : > { %v2405_v33 = vpop.eup %2404  ;;  %2160 = vmatpush3.bf16.msra.mxu1 %v3251_v47 }
 0x365   : > { %v2407_v34 = vpop.eup %2406  ;;  %2153 = vmatprep.subr.bf16.mxu1 %v3258_v49 }
 0x366   : > { %v2409_v35 = vpop.eup %2408 }
 0x367   : > { %v2411_v36 = vpop.eup %2410  ;;  %v2048_v38 = vpop.f32.mrb[28].mxu0  ;;  %v1300_v39 = vpack.c.bf16 %v2409_v35, %v2405_v33 }
 0x368   : > { %v1081_v40 = vadd.f32 %v2048_v38, %v3262_v52  ;;  %v1072_v41 = vpop.f32.mrb[29].mxu0  ;;  %v1299_v42 = vpack.c.bf16 %v2411_v36, %v2407_v34  ;;  %2161 = vmatpush3.bf16.msra.mxu1 %v3258_v49 }
 0x369   : > { %v1073_v43 = vadd.f32 %v3262_v52, %v1072_v41  ;;  %v2049_v46 = vpop.f32.mrb[30].mxu0 }
 0x36a   : > { %2412 = vtanh.f32 %v1081_v40  ;;  %v1084_v48 = vadd.f32 %v2049_v46, %v3262_v52  ;;  %v1075_v50 = vpop.f32.mrb[31].mxu0  ;;  %2106 = vmatprep.mubr.bf16.mxu1 %v1299_v42 }
 0x36b   : > { %2414 = vtanh.f32 %v1073_v43  ;;  %v1076_v51 = vadd.f32 %v3262_v52, %v1075_v50  ;;  %2107 = vmatmul.mubr.bf16.gmra.mrb[40].mxu1 %v1300_v39 }
 0x36c   : > { %2416 = vtanh.f32 %v1084_v48 }
 0x36d   : > { %2418 = vtanh.f32 %v1076_v51 }
 0x36f   : > { %v2068_v45 = vpop.f32.mrb[32].mxu0 }
 0x370   : > { %v1225_v63 = vadd.f32 %v2068_v45, %v3290_v44  ;;  %v1216_v1 = vpop.f32.mrb[33].mxu0 }
 0x371   : > { %v1217_v6 = vadd.f32 %v3290_v44, %v1216_v1  ;;  %v2069_v13 = vpop.f32.mrb[34].mxu0 }
 0x372   : > { %2420 = vtanh.f32 %v1225_v63  ;;  %v1228_v15 = vadd.f32 %v2069_v13, %v3290_v44  ;;  %v1219_v21 = vpop.f32.mrb[35].mxu0 }
 0x373   : > { %2422 = vtanh.f32 %v1217_v6  ;;  %v1220_v29 = vadd.f32 %v3290_v44, %v1219_v21 }
 0x374   : > { %v2413_v31 = vpop.eup %2412  ;;  %2424 = vtanh.f32 %v1228_v15 }
 0x375   : > { %v2415_v37 = vpop.eup %2414  ;;  %2426 = vtanh.f32 %v1220_v29 }
 0x376   : > { %v2417_v47 = vpop.eup %2416 }
 0x377   : > { %v2419_v49 = vpop.eup %2418  ;;  %v2072_v52 = vpop.f32.mrb[36].mxu0  ;;  %v1302_v53 = vpack.c.bf16 %v2417_v47, %v2413_v31  ;;  %v3311_v47 = vld [vmem:[%s3454_s10] ss:$0 sm:$0xff] }
 0x378   : > { %v1241_v54 = vadd.f32 %v2072_v52, %v3290_v44  ;;  %v1232_v55 = vpop.f32.mrb[37].mxu0  ;;  %v1301_v56 = vpack.c.bf16 %v2419_v49, %v2415_v37 }
 0x379   : > { %v1233_v57 = vadd.f32 %v3290_v44, %v1232_v55  ;;  %v2073_v58 = vpop.f32.mrb[38].mxu0 }
 0x37a   : > { %2428 = vtanh.f32 %v1241_v54  ;;  %v1244_v59 = vadd.f32 %v2073_v58, %v3290_v44  ;;  %v1235_v60 = vpop.f32.mrb[39].mxu0  ;;  %2110 = vmatprep.mubr.bf16.mxu1 %v1301_v56 }
 0x37b   : > { %2430 = vtanh.f32 %v1233_v57  ;;  %v1236_v61 = vadd.f32 %v3290_v44, %v1235_v60  ;;  %2111 = vmatmul.mubr.bf16.gmra.mrb[44].mxu1 %v1302_v53 }
 0x37c   : > { %v2421_v62 = vpop.eup %2420  ;;  %2432 = vtanh.f32 %v1244_v59 }
 0x37d   : > { %v2423_v0 = vpop.eup %2422  ;;  %2434 = vtanh.f32 %v1236_v61 }
 0x37e   : > { %v2425_v2 = vpop.eup %2424 }
 0x37f   : > { %v2427_v3 = vpop.eup %2426  ;;  %v2076_v4 = vpop.f32.mrb[40].mxu0  ;;  %v1488_v5 = vpack.c.bf16 %v2425_v2, %v2421_v62 }
 0x380   : > { %v1257_v7 = vadd.f32 %v2076_v4, %v3290_v44  ;;  %v1248_v8 = vpop.f32.mrb[41].mxu0  ;;  %v1487_v9 = vpack.c.bf16 %v2427_v3, %v2423_v0  ;;  %v3327_v4 = vld [vmem:[%s3456_s12] ss:$0 sm:$0xff] }
 0x381   : > { %v1249_v10 = vadd.f32 %v3290_v44, %v1248_v8  ;;  %v2077_v11 = vpop.f32.mrb[42].mxu0 }
 0x382   : > { %2436 = vtanh.f32 %v1257_v7  ;;  %v1260_v12 = vadd.f32 %v2077_v11, %v3290_v44  ;;  %v1251_v14 = vpop.f32.mrb[43].mxu0  ;;  %2130 = vmatprep.mubr.bf16.mxu0 %v1487_v9 }
 0x383   : > { %2438 = vtanh.f32 %v1249_v10  ;;  %v1252_v16 = vadd.f32 %v3290_v44, %v1251_v14  ;;  %2131 = vmatmul.mubr.bf16.vlgmr.msra.gmra.mrb[48].mxu0 %v1488_v5 }
 0x384   : > { %v2429_v17 = vpop.eup %2428  ;;  %2440 = vtanh.f32 %v1260_v12 }
 0x385   : > { %v2431_v18 = vpop.eup %2430  ;;  %2442 = vtanh.f32 %v1252_v16 }
 0x386   : > { %v2433_v19 = vpop.eup %2432 }
 0x387   : > { %v2435_v20 = vpop.eup %2434  ;;  %v2080_v22 = vpop.f32.mrb[44].mxu0  ;;  %v1490_v23 = vpack.c.bf16 %v2433_v19, %v2429_v17 }
 0x388   : > { %v1273_v24 = vadd.f32 %v2080_v22, %v3290_v44  ;;  %v1264_v25 = vpop.f32.mrb[45].mxu0  ;;  %v1489_v26 = vpack.c.bf16 %v2435_v20, %v2431_v18 }
 0x389   : > { %v1265_v27 = vadd.f32 %v3290_v44, %v1264_v25  ;;  %v2081_v28 = vpop.f32.mrb[46].mxu0 }
 0x38a   : > { %2444 = vtanh.f32 %v1273_v24  ;;  %v1276_v30 = vadd.f32 %v2081_v28, %v3290_v44  ;;  %v1267_v32 = vpop.f32.mrb[47].mxu0  ;;  %2134 = vmatprep.mubr.bf16.mxu0 %v1489_v26 }
 0x38b   : > { %2446 = vtanh.f32 %v1265_v27  ;;  %v1268_v33 = vadd.f32 %v3290_v44, %v1267_v32  ;;  %2135 = vmatmul.mubr.bf16.gmra.mrb[52].mxu0 %v1490_v23 }
 0x38c   : > { %v2437_v34 = vpop.eup %2436  ;;  %2448 = vtanh.f32 %v1276_v30 }
 0x38d   : > { %v2439_v35 = vpop.eup %2438  ;;  %2450 = vtanh.f32 %v1268_v33 }
 0x38e   : > { %v2441_v36 = vpop.eup %2440 }
 0x38f   : > { %v2443_v38 = vpop.eup %2442  ;;  %v1492_v39 = vpack.c.bf16 %v2441_v36, %v2437_v34 }
 0x390   : > { %v1491_v40 = vpack.c.bf16 %v2443_v38, %v2439_v35 }
 0x392   : > { %2138 = vmatprep.mubr.bf16.mxu0 %v1491_v40 }
 0x393   : > { %2139 = vmatmul.mubr.bf16.gmra.mrb[56].mxu0 %v1492_v39 }
 0x394   : > { %v2445_v41 = vpop.eup %2444 }
 0x395   : > { %v2447_v42 = vpop.eup %2446 }
 0x396   : > { %v2449_v43 = vpop.eup %2448 }
 0x397   : > { %v2451_v46 = vpop.eup %2450  ;;  %v1494_v48 = vpack.c.bf16 %v2449_v43, %v2445_v41 }
 0x398   : > { %v1493_v50 = vpack.c.bf16 %v2451_v46, %v2447_v42 }
 0x39a   : > { %2142 = vmatprep.mubr.bf16.mxu1 %v1493_v50 }
 0x39b   : > { %2143 = vmatmul.mubr.bf16.vlgmr.msra.gmra.mrb[48].mxu1 %v1494_v48 }
 0x41e   : > { %v2100_v51 = vpop.f32.mrb[32].mxu1 }
 0x41f   : > { %v1408_v44 = vpop.f32.mrb[33].mxu1  ;;  %v1417_v49 = vadd.f32 %v2100_v51, %v3311_v47 }
 0x420   : > { %v2101_v45 = vpop.f32.mrb[34].mxu1  ;;  %v1409_v52 = vadd.f32 %v3311_v47, %v1408_v44 }
 0x421   : > { %v1411_v63 = vpop.f32.mrb[35].mxu1  ;;  %v1420_v53 = vadd.f32 %v2101_v45, %v3311_v47  ;;  %2452 = vtanh.f32 %v1417_v49 }
 0x422   : > { %v1412_v54 = vadd.f32 %v3311_v47, %v1411_v63  ;;  %2454 = vtanh.f32 %v1409_v52 }
 0x423   : > { %2456 = vtanh.f32 %v1420_v53 }
 0x424   : > { %2458 = vtanh.f32 %v1412_v54 }
 0x42b   : > { %v2453_v9 = vpop.eup %2452 }
 0x42c   : > { %v2455_v12 = vpop.eup %2454 }
 0x42d   : > { %v2457_v18 = vpop.eup %2456 }
 0x42e   : > { %v2104_v1 = vpop.f32.mrb[36].mxu1  ;;  %v2459_v22 = vpop.eup %2458 }
 0x42f   : > { %v1424_v6 = vpop.f32.mrb[37].mxu1  ;;  %v1433_v55 = vadd.f32 %v2104_v1, %v3311_v47 }
 0x430   : > { %v2105_v13 = vpop.f32.mrb[38].mxu1  ;;  %v1425_v57 = vadd.f32 %v3311_v47, %v1424_v6 }
 0x431   : > { %v1427_v15 = vpop.f32.mrb[39].mxu1  ;;  %v1436_v59 = vadd.f32 %v2105_v13, %v3311_v47  ;;  %2460 = vtanh.f32 %v1433_v55 }
 0x432   : > { %v1428_v61 = vadd.f32 %v3311_v47, %v1427_v15  ;;  %2462 = vtanh.f32 %v1425_v57 }
 0x433   : > { %2464 = vtanh.f32 %v1436_v59 }
 0x434   : > { %2466 = vtanh.f32 %v1428_v61 }
 0x43b   : > { %v2461_v24 = vpop.eup %2460 }
 0x43c   : > { %v2463_v26 = vpop.eup %2462 }
 0x43d   : > { %v2465_v27 = vpop.eup %2464 }
 0x43e   : > { %v2108_v21 = vpop.f32.mrb[40].mxu1  ;;  %v2467_v30 = vpop.eup %2466 }
 0x43f   : > { %v1440_v29 = vpop.f32.mrb[41].mxu1  ;;  %v1449_v0 = vadd.f32 %v2108_v21, %v3311_v47 }
 0x440   : > { %v2109_v31 = vpop.f32.mrb[42].mxu1  ;;  %v1441_v2 = vadd.f32 %v3311_v47, %v1440_v29 }
 0x441   : > { %v1443_v37 = vpop.f32.mrb[43].mxu1  ;;  %v1452_v3 = vadd.f32 %v2109_v31, %v3311_v47  ;;  %2468 = vtanh.f32 %v1449_v0 }
 0x442   : > { %2470 = vtanh.f32 %v1441_v2  ;;  %v1444_v14 = vadd.f32 %v3311_v47, %v1443_v37 }
 0x443   : > { %2472 = vtanh.f32 %v1452_v3 }
 0x44b   : > { %v3338_v34 = vpop.eup %2468 }
 0x44c   : > { %v3341_v38 = vpop.eup %2470 }
 0x44d   : > { %v3345_v42 = vpop.eup %2472 }
 0x44e   : > { %v2112_v56 = vpop.f32.mrb[44].mxu1 }
 0x44f   : > { %v1456_v58 = vpop.f32.mrb[45].mxu1  ;;  %v1465_v19 = vadd.f32 %v2112_v56, %v3311_v47 }
 0x450   : > { %v2113_v60 = vpop.f32.mrb[46].mxu1  ;;  %v1457_v23 = vadd.f32 %v3311_v47, %v1456_v58 }
 0x451   : > { %v1459_v62 = vpop.f32.mrb[47].mxu1  ;;  %v1468_v25 = vadd.f32 %v2113_v60, %v3311_v47 }
 0x452   : > { %v1460_v39 = vadd.f32 %v3311_v47, %v1459_v62 }
 0x456   : > { %v2132_v5 = vpop.f32.mrb[48].mxu0 }
 0x457   : > { %v1609_v7 = vadd.f32 %v2132_v5, %v3327_v4  ;;  %v1600_v8 = vpop.f32.mrb[49].mxu0 }
 0x458   : > { %v1601_v10 = vadd.f32 %v3327_v4, %v1600_v8  ;;  %v2133_v11 = vpop.f32.mrb[50].mxu0 }
 0x459   : > { %2474 = vtanh.f32 %v1609_v7  ;;  %v1612_v16 = vadd.f32 %v2133_v11, %v3327_v4  ;;  %v1603_v17 = vpop.f32.mrb[51].mxu0 }
 0x45a   : > { %2476 = vtanh.f32 %v1601_v10  ;;  %v1604_v20 = vadd.f32 %v3327_v4, %v1603_v17 }
 0x45b   : > { %2478 = vtanh.f32 %v1612_v16 }
 0x45c   : > { %2480 = vtanh.f32 %v1604_v20 }
 0x45d   : > { %2482 = vtanh.f32 %v1444_v14 }
 0x45e   : > { %2484 = vtanh.f32 %v1465_v19  ;;  %v2136_v28 = vpop.f32.mrb[52].mxu0 }
 0x45f   : > { %2486 = vtanh.f32 %v1457_v23  ;;  %v1625_v32 = vadd.f32 %v2136_v28, %v3327_v4  ;;  %v1616_v33 = vpop.f32.mrb[53].mxu0 }
 0x460   : > { %2488 = vtanh.f32 %v1468_v25  ;;  %v1617_v35 = vadd.f32 %v3327_v4, %v1616_v33  ;;  %v2137_v36 = vpop.f32.mrb[54].mxu0 }
 0x461   : > { %2490 = vtanh.f32 %v1625_v32  ;;  %v1628_v40 = vadd.f32 %v2137_v36, %v3327_v4  ;;  %v1619_v41 = vpop.f32.mrb[55].mxu0 }
 0x462   : > { %2492 = vtanh.f32 %v1617_v35  ;;  %v1620_v43 = vadd.f32 %v3327_v4, %v1619_v41 }
 0x463   : > { %v2475_v46 = vpop.eup %2474  ;;  %2494 = vtanh.f32 %v1628_v40 }
 0x464   : > { %v2477_v48 = vpop.eup %2476  ;;  %v1681_v50 = vadd.f32 %v2475_v46, %v2453_v9  ;;  %2496 = vtanh.f32 %v1620_v43 }
 0x465   : > { %v2479_v51 = vpop.eup %2478  ;;  %2498 = vtanh.f32 %v1460_v39  ;;  %v1679_v44 = vadd.f32 %v2477_v48, %v2455_v12 }
 0x466   : > { %v2481_v45 = vpop.eup %2480  ;;  %2500 = vtanh.f32 %v1681_v50  ;;  %v1682_v63 = vadd.f32 %v2479_v51, %v2457_v18  ;;  %v2140_v1 = vpop.f32.mrb[56].mxu0 }
 0x467   : > { %v3348_v6 = vpop.eup %2482  ;;  %2502 = vtanh.f32 %v1679_v44  ;;  %v1680_v13 = vadd.f32 %v2481_v45, %v2459_v22  ;;  %v1641_v15 = vadd.f32 %v2140_v1, %v3327_v4  ;;  %v1632_v21 = vpop.f32.mrb[57].mxu0 }
 0x468   : > { %v3351_v29 = vpop.eup %2484  ;;  %2504 = vtanh.f32 %v1682_v63  ;;  %v1633_v31 = vadd.f32 %v3327_v4, %v1632_v21  ;;  %v2141_v37 = vpop.f32.mrb[58].mxu0 }
 0x469   : > { %v3355_v47 = vpop.eup %2486  ;;  %2506 = vtanh.f32 %v1680_v13  ;;  %v1644_v49 = vadd.f32 %v2141_v37, %v3327_v4  ;;  %v1635_v52 = vpop.f32.mrb[59].mxu0 }
 0x46a   : > { %v3358_v53 = vpop.eup %2488  ;;  %2508 = vtanh.f32 %v1641_v15  ;;  %v1636_v54 = vadd.f32 %v3327_v4, %v1635_v52 }
 0x46b   : > { %v2491_v55 = vpop.eup %2490  ;;  %2510 = vtanh.f32 %v1633_v31 }
 0x46c   : > { %v2493_v56 = vpop.eup %2492  ;;  %v1685_v57 = vadd.f32 %v2491_v55, %v2461_v24  ;;  %2512 = vtanh.f32 %v1644_v49 }
 0x46d   : > { %v2495_v58 = vpop.eup %2494  ;;  %v1683_v59 = vadd.f32 %v2493_v56, %v2463_v26  ;;  %2514 = vtanh.f32 %v1636_v54 }
 0x46e   : > { %v2497_v60 = vpop.eup %2496  ;;  %2516 = vtanh.f32 %v1685_v57  ;;  %v1686_v61 = vadd.f32 %v2495_v58, %v2465_v27  ;;  %v2144_v62 = vpop.f32.mrb[48].mxu1 }
 0x46f   : > { %v2499_v0 = vpop.eup %2498  ;;  %2518 = vtanh.f32 %v1683_v59  ;;  %v1684_v2 = vadd.f32 %v2497_v60, %v2467_v30  ;;  %v1657_v3 = vadd.f32 %v2144_v62, %v3327_v4  ;;  %v1648_v5 = vpop.f32.mrb[49].mxu1 }
 0x470   : > { %v2501_v7 = vpop.eup %2500  ;;  %2520 = vtanh.f32 %v1686_v61  ;;  %v1649_v8 = vadd.f32 %v3327_v4, %v1648_v5  ;;  %v2145_v9 = vpop.f32.mrb[50].mxu1 }
 0x471   : > { %v2503_v10 = vpop.eup %2502  ;;  %1713 = vst [vmem:[%s3365_s24 + $0x10] sm:$0xff] %v2501_v7  ;;  %2522 = vtanh.f32 %v1684_v2  ;;  %v1660_v11 = vadd.f32 %v2145_v9, %v3327_v4  ;;  %v1651_v12 = vpop.f32.mrb[51].mxu1 }
 0x472   : > { %v2505_v14 = vpop.eup %2504  ;;  %1711 = vst [vmem:[%s3365_s24] sm:$0xff] %v2503_v10  ;;  %2524 = vtanh.f32 %v1657_v3  ;;  %v1652_v16 = vadd.f32 %v3327_v4, %v1651_v12 }
 0x473   : > { %v2507_v17 = vpop.eup %2506  ;;  %1714 = vst [vmem:[%s3365_s24 + $0x18] sm:$0xff] %v2505_v14  ;;  %2526 = vtanh.f32 %v1649_v8 }
 0x474   : > { %v2509_v18 = vpop.eup %2508  ;;  %1712 = vst [vmem:[%s3365_s24 + $0x8] sm:$0xff] %v2507_v17  ;;  %2528 = vtanh.f32 %v1660_v11 }
 0x475   : > { %v2511_v19 = vpop.eup %2510  ;;  %v1689_v20 = vadd.f32 %v2509_v18, %v3338_v34  ;;  %2530 = vtanh.f32 %v1652_v16 }
 0x476   : > { %v2513_v22 = vpop.eup %2512  ;;  %v1687_v23 = vadd.f32 %v2511_v19, %v3341_v38 }
 0x477   : > { %v2515_v24 = vpop.eup %2514  ;;  %2532 = vtanh.f32 %v1689_v20  ;;  %v1690_v4 = vadd.f32 %v2513_v22, %v3345_v42 }
 0x478   : > { %v2517_v25 = vpop.eup %2516  ;;  %2534 = vtanh.f32 %v1687_v23  ;;  %v1688_v26 = vadd.f32 %v2515_v24, %v3348_v6 }
 0x479   : > { %v2519_v27 = vpop.eup %2518  ;;  %1717 = vst [vmem:[%s3365_s24 + $0x30] sm:$0xff] %v2517_v25  ;;  %2536 = vtanh.f32 %v1690_v4 }
 0x47a   : > { %v2521_v28 = vpop.eup %2520  ;;  %1715 = vst [vmem:[%s3365_s24 + $0x20] sm:$0xff] %v2519_v27  ;;  %2538 = vtanh.f32 %v1688_v26 }
 0x47b   : > { %v2523_v30 = vpop.eup %2522  ;;  %1718 = vst [vmem:[%s3365_s24 + $0x38] sm:$0xff] %v2521_v28 }
 0x47c   : > { %v2525_v32 = vpop.eup %2524  ;;  %1716 = vst [vmem:[%s3365_s24 + $0x28] sm:$0xff] %v2523_v30 }
 0x47d   : > { %v2527_v33 = vpop.eup %2526  ;;  %v1693_v34 = vadd.f32 %v2525_v32, %v3351_v29 }
 0x47e   : > { %v2529_v35 = vpop.eup %2528  ;;  %v1691_v36 = vadd.f32 %v2527_v33, %v3355_v47 }
 0x47f   : > { %v2531_v38 = vpop.eup %2530  ;;  %2540 = vtanh.f32 %v1693_v34  ;;  %v1694_v39 = vadd.f32 %v2529_v35, %v3358_v53 }
 0x480   : > { %2542 = vtanh.f32 %v1691_v36  ;;  %v1692_v40 = vadd.f32 %v2531_v38, %v2499_v0 }
 0x481   : > { %v2533_v41 = vpop.eup %2532  ;;  %2544 = vtanh.f32 %v1694_v39 }
 0x482   : > { %v2535_v42 = vpop.eup %2534  ;;  %1721 = vst [vmem:[%s3365_s24 + $0x50] sm:$0xff] %v2533_v41  ;;  %2546 = vtanh.f32 %v1692_v40 }
 0x483   : > { %v2537_v43 = vpop.eup %2536  ;;  %1719 = vst [vmem:[%s3365_s24 + $0x40] sm:$0xff] %v2535_v42 }
 0x484   : > { %v2539_v46 = vpop.eup %2538  ;;  %1722 = vst [vmem:[%s3365_s24 + $0x58] sm:$0xff] %v2537_v43 }
 0x485   : > { %1720 = vst [vmem:[%s3365_s24 + $0x48] sm:$0xff] %v2539_v46 }
 0x489   : > { %v2541_v48 = vpop.eup %2540 }
 0x48a   : > { %v2543_v50 = vpop.eup %2542  ;;  %1725 = vst [vmem:[%s3365_s24 + $0x70] sm:$0xff] %v2541_v48 }
 0x48b   : > { %v2545_v51 = vpop.eup %2544  ;;  %1723 = vst [vmem:[%s3365_s24 + $0x60] sm:$0xff] %v2543_v50 }
 0x48c   : > { %v2547_v44 = vpop.eup %2546  ;;  %1726 = vst [vmem:[%s3365_s24 + $0x78] sm:$0xff] %v2545_v51 }
 0x48d   : > { %1724 = vst [vmem:[%s3365_s24 + $0x68] sm:$0xff] %v2547_v44 }
 0x48e   : > { %2673 = shalt.err (!%p2670_p1)
}
 0x48f   : > { %s2674_s27 = scalar_lea.hbm %s3394_s2, 2048  ;;  %s2678_s17 = scalar_lea.hbm %s3489_s23, 4096 }
 0x490   : > { %p2675_p0 = scmp.ne.s32.totalorder %s3394_s2, %s2674_s27  ;;  %p2679_p9 = scmp.lt.u32.totalorder %s3394_s2, %s3489_s23 }
 0x491   : > { %p2680_p12 = scmp.lt.u32.totalorder %s2678_s17, %s2674_s27  ;;  %p2682_p2 = scmp.lt.u32.totalorder %s2674_s27, %s3394_s2 }
 0x492   : > { %p2676_p6 = pnand %p2675_p0, %p3490_p3 }
 0x493   : > { %p2681_p10 = por %p2680_p12, %p2679_p9 }
 0x494   : > { %p2677_p5 = pneg %p2676_p6 }
 0x495   : > { %p2683_p4 = por %p2682_p2, %p2681_p10 }
 0x497   : > { %p2684_p7 = pnand %p2683_p4, %p2677_p5 }
 0x499   : > { %2687 = shalt.err (!%p2684_p7)
}
 0x49a   : > { %s2744_s13 = smov 128   ;;  %s2745_s20 = smov 8  }
 0x49b   : > { %2178 = dma.vmem_to_hbm [thread:$0]  (%p3490_p3), %s3396_s28, 2048, %s3394_s2, %s3403_s29, %s2744_s13, %s2744_s13, %s2745_s20  }
 0x49c PF: > { %s3491_s30 = sld [smem:[#allocation17_spill]]  ;;  %s3492_s19 = sld [smem:[#allocation15_spill]] }
 0x49d   : > { %s3493_s25 = sld [smem:[#allocation20_spill]] }
 0x4a2   : > { %p2205_p8 = scmp.ge.s32.totalorder %s3491_s30, 2  ;;  %s1756_s21 = sand.u32 1, %s3492_s19  }
 0x4a3   : > { %p3494_p11 = scmp.ne.s32.totalorder %s3493_s25, 0  ;;  %s1757_s15 = scalar_lea.sflag [#allocation4], %s1756_s21 }
 0x4a5   : > { %p2194_p13 = pnand %p2205_p8, %p3494_p11 }
 0x4a7   : > { %2717 = dma.done.wait (!%p2194_p13), %s1757_s15, 2048  }
 0x4a8   : > { %2719 = vsyncadd (!%p2194_p13), %s1757_s15, 4294965248  ;;  %s3495_s28 = sld [smem:[#allocation18_spill]]  ;;  %s3496_s27 = sld [smem:[#allocation16_spill]] }
 0x4a9   : > { %s3497_s14 = sld [smem:[#allocation19_spill]]  ;;  %s3498_s25 = smov %s2726_s26 }
 0x4ae   : > { %p26_p1 = scmp.ge.s32.totalorder %s3495_s28, 4   ;;  %s3499_s26 = smov %s3496_s27 }
 0x4af   : > { %s3500_s27 = smov %s3497_s14 }
 0x4b0   :  { %28 = sbr.rel (!%p26_p1) target bundleno = 9 (0x9), region = 124 }
 0x4b7   :  { %1762 = vsyncpa [#allocation3], 1 }
 0x4b8   :  { %1764 = vsyncpa [#allocation3 + $0x1], 1 }
 0x4b9   :  { %1765 = vsyncpa [#allocation6], 1 }
 0x4ba   :  { %1766 = vsyncpa [#allocation9], 1 }
 0x4bb   :  { %1767 = vsyncpa [#allocation4], 1 }
 0x4bc   :  { %1769 = vsyncpa [#allocation4 + $0x1], 1 }

</bundles_post_ra>
